<compile_context>
chip_gen: v7x
topology: tpu7x:2x2x1
jax: 0.10.0
libtpu: 0.0.40
codegen_flags: <defaults>
</compile_context>

<pallas_src>
import functools

import jax
import jax.numpy as jnp
from jax import lax
from jax.experimental import pallas as pl
from jax.experimental.pallas import tpu as pltpu


# ----------------------------------------------------------------------------
# Fused Pallas kernel: compression + z + estimator + GMM sufficient statistics
# ----------------------------------------------------------------------------
def _vgpmm_fused_kernel(
        x_ref,                                    # [1, C, TN]  f32
        wenc_ref, benc_ref, wdec_ref, bdec_ref,   # compression weights
        w1_ref, b1_ref, w2_ref, b2_ref,           # estimator weights
        z_ref,                                    # [1, L, TN]  f32 (per tile)
        phi_ref, mu_ref, cov_ref, sse_ref,        # per-batch-element outputs
        sg_acc, musum_acc, ssum_acc, sse_acc,     # VMEM accumulators
        *, num_pro, latent_dim, total_n):
    t = pl.program_id(1)
    nt = pl.num_programs(1)
    ce = latent_dim - 2

    # ---- reset per-batch accumulators on the first HW tile ------------------
    @pl.when(t == 0)
    def _():
        sg_acc[...] = jnp.zeros_like(sg_acc)
        musum_acc[...] = jnp.zeros_like(musum_acc)
        ssum_acc[...] = jnp.zeros_like(ssum_acc)
        sse_acc[...] = jnp.zeros_like(sse_acc)

    x = x_ref[0]                                            # [C, TN] f32

    # ---- compression (1x1 convs as matmuls; bf16 operands, f32 accumulate) --
    xb = x.astype(jnp.bfloat16)
    enc = jnp.dot(wenc_ref[...], xb,
                  preferred_element_type=jnp.float32) + benc_ref[...]      # [Ce, TN]
    dec = jnp.dot(wdec_ref[...], enc.astype(jnp.bfloat16),
                  preferred_element_type=jnp.float32) + bdec_ref[...]      # [C,  TN]

    # ---- reconstruction features (f32 elementwise; rsqrt on the EUP) --------
    dot_xe = jnp.sum(x * enc, axis=0, keepdims=True)        # [1, TN]
    nx2 = jnp.sum(x * x, axis=0, keepdims=True)
    ne2 = jnp.sum(enc * enc, axis=0, keepdims=True)
    cos = (dot_xe * lax.rsqrt(jnp.maximum(nx2, 1e-16))
                  * lax.rsqrt(jnp.maximum(ne2, 1e-16)))     # [1, TN]
    diff = x - dec
    d2 = jnp.sum(diff * diff, axis=0, keepdims=True)        # [1, TN]
    euc = jnp.sqrt(d2)

    # ---- z: write slices directly into the lane-dense output (no concat) ----
    z_ref[0, 0:ce, :] = enc
    z_ref[0, ce:ce + 1, :] = cos
    z_ref[0, ce + 1:ce + 2, :] = euc
    z = z_ref[0]                                            # [L, TN] f32

    # ---- estimation net -> gamma (never written to HBM) ---------------------
    zb = z.astype(jnp.bfloat16)
    h = jnp.tanh(jnp.dot(w1_ref[...], zb,
                         preferred_element_type=jnp.float32) + b1_ref[...])   # [H, TN]
    logits = jnp.dot(w2_ref[...], h.astype(jnp.bfloat16),
                     preferred_element_type=jnp.float32) + b2_ref[...]        # [K, TN]
    m = jnp.max(logits, axis=0, keepdims=True)
    e = jnp.exp(logits - m)
    gamma = e * pl.reciprocal(jnp.sum(e, axis=0, keepdims=True), approx=True)  # [K, TN]

    # ---- GMM sufficient statistics for this tile (f32 accumulation) ---------
    sg = jnp.sum(gamma, axis=1, keepdims=True)                                 # [K, 1]
    musum = lax.dot_general(gamma, z, (((1,), (1,)), ((), ())),
                            preferred_element_type=jnp.float32)                # [K, L]
    # Second moments for ALL k in one matmul: [K*L, TN] x [TN, L] -> [K*L, L].
    gz = gamma[:, None, :] * z[None, :, :]                                     # [K, L, TN]
    w = gz.reshape(num_pro * latent_dim, gz.shape[-1])                         # [K*L, TN]
    smom = lax.dot_general(w, z, (((1,), (1,)), ((), ())),
                           preferred_element_type=jnp.float32)                 # [K*L, L]

    sg_acc[...] += sg
    musum_acc[...] += musum
    ssum_acc[...] += smom
    sse_acc[...] += jnp.sum(d2, axis=1, keepdims=True)                         # [1, 1]

    # ---- finalize on the last HW tile of this batch element -----------------
    @pl.when(t == nt - 1)
    def _():
        sg_f = sg_acc[...]                                                     # [K, 1]
        inv_sg = pl.reciprocal(sg_f + 1e-12, approx=True)                      # [K, 1]
        phi = sg_f * (1.0 / float(total_n))                                    # [K, 1]
        mu = musum_acc[...] * inv_sg                                           # [K, L]
        s_full = ssum_acc[...].reshape(num_pro, latent_dim, latent_dim)        # [K, L, L]
        ezzt = s_full * inv_sg[:, :, None]
        cov = ezzt - mu[:, :, None] * mu[:, None, :]                           # [K, L, L]
        phi_ref[0] = phi
        mu_ref[0] = mu
        cov_ref[0] = cov
        sse_ref[0] = sse_acc[...]


# ----------------------------------------------------------------------------
# Pallas wrapper
# ----------------------------------------------------------------------------
def _pick_hw_tile(hw):
    # Big enough to amortize the ~0.35 us/grid-step overhead; live f32 tiles
    # here are only a few hundred KiB, so TN=512 is safe even on v7x (64 MiB).
    for tn in (512, 256, 128):
        if hw % tn == 0:
            return tn
    return hw  # block == full array dim also satisfies the (8,128) rule


def vgpmm_fused_stats(x, params, num_pro):
    """x: [B2, C, HW] f32 -> (z [B2,L,HW], phi [B2,K], mu [B2,K,L],
    cov [B2,K,L,L], sse [B2])."""
    b2, c, hw = x.shape
    ce = params['wenc_t'].shape[0]
    hid = params['w1_t'].shape[0]
    l = ce + 2
    k = num_pro
    tn = _pick_hw_tile(hw)
    grid = (b2, hw // tn)

    kernel = functools.partial(_vgpmm_fused_kernel, num_pro=k,
                               latent_dim=l, total_n=hw)
    z, phi, mu, cov, sse = pl.pallas_call(
        kernel,
        out_shape=(jax.ShapeDtypeStruct((b2, l, hw), jnp.float32),
                   jax.ShapeDtypeStruct((b2, k, 1), jnp.float32),
                   jax.ShapeDtypeStruct((b2, k, l), jnp.float32),
                   jax.ShapeDtypeStruct((b2, k, l, l), jnp.float32),
                   jax.ShapeDtypeStruct((b2, 1, 1), jnp.float32)),
        grid_spec=pltpu.PrefetchScalarGridSpec(
            num_scalar_prefetch=0,
            grid=grid,
            in_specs=[
                pl.BlockSpec((1, c, tn), lambda b, t: (b, 0, t)),
                pl.BlockSpec((ce, c), lambda b, t: (0, 0)),
                pl.BlockSpec((ce, 1), lambda b, t: (0, 0)),
                pl.BlockSpec((c, ce), lambda b, t: (0, 0)),
                pl.BlockSpec((c, 1), lambda b, t: (0, 0)),
                pl.BlockSpec((hid, l), lambda b, t: (0, 0)),
                pl.BlockSpec((hid, 1), lambda b, t: (0, 0)),
                pl.BlockSpec((k, hid), lambda b, t: (0, 0)),
                pl.BlockSpec((k, 1), lambda b, t: (0, 0)),
            ],
            out_specs=(
                pl.BlockSpec((1, l, tn), lambda b, t: (b, 0, t)),
                pl.BlockSpec((1, k, 1), lambda b, t: (b, 0, 0)),
                pl.BlockSpec((1, k, l), lambda b, t: (b, 0, 0)),
                pl.BlockSpec((1, k, l, l), lambda b, t: (b, 0, 0, 0)),
                pl.BlockSpec((1, 1, 1), lambda b, t: (b, 0, 0)),
            ),
            scratch_shapes=[
                pltpu.VMEM((k, 1), jnp.float32),
                pltpu.VMEM((k, l), jnp.float32),
                pltpu.VMEM((k * l, l), jnp.float32),
                pltpu.VMEM((1, 1), jnp.float32),
            ]),
        compiler_params=pltpu.CompilerParams(
            dimension_semantics=("parallel", "arbitrary")),
    )(x, params['wenc_t'], params['benc'], params['wdec_t'], params['bdec'],
      params['w1_t'], params['b1'], params['w2_t'], params['b2'])
    return z, phi[:, :, 0], mu, cov, sse[:, 0, 0]


# ----------------------------------------------------------------------------
# Plain-JAX glue (no clean Pallas equivalent: resize, Cholesky, triangular
# solve, categorical/normal sampling, KL between MVNs)
# ----------------------------------------------------------------------------
def bilinear_resize_align_corners(x, out_h, out_w):
    # x: [B, C, H, W] (NCHW), align_corners=True bilinear, like F.interpolate.
    _, _, h, w = x.shape

    def coords(out_dim, in_dim):
        if out_dim == 1:
            return jnp.zeros((out_dim,), jnp.float32)
        return jnp.arange(out_dim, dtype=jnp.float32) * (in_dim - 1) / (out_dim - 1)

    ys, xs = coords(out_h, h), coords(out_w, w)
    y0 = jnp.floor(ys).astype(jnp.int32)
    x0 = jnp.floor(xs).astype(jnp.int32)
    y1 = jnp.clip(y0 + 1, 0, h - 1)
    x1 = jnp.clip(x0 + 1, 0, w - 1)
    wy = (ys - y0.astype(jnp.float32))[None, None, :, None]
    wx = (xs - x0.astype(jnp.float32))[None, None, None, :]

    def g(yi, xi):
        return x[:, :, yi, :][:, :, :, xi]

    top = g(y0, x0) * (1.0 - wx) + g(y0, x1) * wx
    bot = g(y1, x0) * (1.0 - wx) + g(y1, x1) * wx
    return top * (1.0 - wy) + bot * wy


def get_pd(cov):
    l = cov.shape[-1]
    d = jnp.diagonal(cov, axis1=-2, axis2=-1)
    d = jnp.where(d > 1e-6, d, 1e-6)
    d = jnp.where(jnp.isnan(d), 1e-6, d)
    return cov + jnp.eye(l, dtype=cov.dtype) * d[..., None, :]


def tri_inv(chol):
    # Inverse of a lower-triangular Cholesky factor, batched over leading dims.
    l = chol.shape[-1]
    eye = jnp.broadcast_to(jnp.eye(l, dtype=chol.dtype), chol.shape)
    return jax.scipy.linalg.solve_triangular(chol, eye, lower=True)


def gmm_log_prob_chol(points, phi, mu, chol, linv):
    # points: [P, B, L]; phi: [B, K]; mu: [B, K, L]; chol/linv: [B, K, L, L]
    l = mu.shape[-1]
    diff = points[:, :, None, :] - mu[None]                                # [P,B,K,L]
    y = jnp.einsum('bkij,pbkj->pbki', linv, diff)
    maha = jnp.sum(y * y, axis=-1)                                         # [P,B,K]
    logdet = 2.0 * jnp.sum(jnp.log(jnp.diagonal(chol, axis1=-2, axis2=-1)), axis=-1)
    comp = -0.5 * (l * jnp.log(2.0 * jnp.pi) + logdet[None] + maha)
    logmix = jnp.log(jnp.maximum(phi, 1e-12))[None]
    return jax.scipy.special.logsumexp(logmix + comp, axis=-1)             # [P, B]


def kl_mvn_chol(mu0, chol0, mu1, chol1, linv1):
    # KL(N0 || N1), batched over [B, K], Cholesky-based.
    l = mu0.shape[-1]
    a = jnp.einsum('...ij,...jk->...ik', linv1, chol0)
    tr = jnp.sum(a * a, axis=(-2, -1))
    diff = mu1 - mu0
    y = jnp.einsum('...ij,...j->...i', linv1, diff)
    m = jnp.sum(y * y, axis=-1)
    ld0 = 2.0 * jnp.sum(jnp.log(jnp.diagonal(chol0, axis1=-2, axis2=-1)), axis=-1)
    ld1 = 2.0 * jnp.sum(jnp.log(jnp.diagonal(chol1, axis1=-2, axis2=-1)), axis=-1)
    return 0.5 * (tr + m - l + ld1 - ld0)


def sample_gmm(key, phi, mu, chol, num_samples):
    # MixtureSameFamily.sample([num_samples]) -> [num_samples, B, L]
    b, _, l = mu.shape
    k1, k2 = jax.random.split(key)
    comps = jax.random.categorical(k1, jnp.log(jnp.maximum(phi, 1e-12)),
                                   shape=(num_samples, b))
    eps = jax.random.normal(k2, (num_samples, b, l), jnp.float32)
    bidx = jnp.arange(b)[None, :]
    mu_sel = mu[bidx, comps]                                               # [S, B, L]
    chol_sel = chol[bidx, comps]                                           # [S, B, L, L]
    return mu_sel + jnp.einsum('sblm,sbm->sbl', chol_sel, eps)


# ----------------------------------------------------------------------------
# Full VGPMMs forward
# ----------------------------------------------------------------------------
def vgpmms_forward(support_feature, support_mask, query_feature, params,
                   key, num_pro):
    b, c, h, w = support_feature.shape
    hw = h * w

    mask = bilinear_resize_align_corners(support_mask, h, w)
    fg_feature = support_feature * mask                                    # NCHW

    # Merge fg + query into one batch of 2B; NCHW -> [2B, C, HW] (lane = HW).
    x_all = jnp.concatenate([fg_feature, query_feature], axis=0)
    x_all = x_all.reshape(2 * b, c, hw).astype(jnp.float32)

    # --- fused Pallas kernel: z + GMM params + reconstruction SSE
    z_all, phi_all, mu_all, cov_all, sse_all = vgpmm_fused_stats(
        x_all, params, num_pro)

    z_fg, z_q = z_all[:b], z_all[b:]                                       # [B, L, HW]
    phi_fg, phi_q = phi_all[:b], phi_all[b:]                               # [B, K]
    mu_fg, mu_q = mu_all[:b], mu_all[b:]                                   # [B, K, L]
    cov_fg = get_pd(cov_all[:b])
    cov_q = get_pd(cov_all[b:])
    mse = (jnp.sum(sse_all[:b]) + jnp.sum(sse_all[b:])) / (b * c * hw)

    # --- Cholesky factors (shared by sampling, log-prob and KL)
    chol_fg = jnp.linalg.cholesky(cov_fg)
    chol_q = jnp.linalg.cholesky(cov_q)
    linv_fg = tri_inv(chol_fg)
    linv_q = tri_inv(chol_q)

    # --- sampling from the mixtures (plain JAX; distribution ops)
    kfg, kq = jax.random.split(key)
    fs_fg = sample_gmm(kfg, phi_fg, mu_fg, chol_fg, num_pro)               # [K, B, L]
    fs_q = sample_gmm(kq, phi_q, mu_q, chol_q, num_pro)
    feature_sampling_fg = jnp.transpose(fs_fg, (1, 0, 2))                  # [B, K, L]
    feature_sampling_q = jnp.transpose(fs_q, (1, 0, 2))

    # --- energies / losses
    pts_fg = jnp.transpose(z_fg, (2, 0, 1))                                # [HW, B, L]
    pts_q = jnp.transpose(z_q, (2, 0, 1))
    enc_energy_fg = -jnp.mean(gmm_log_prob_chol(pts_fg, phi_fg, mu_fg,
                                                chol_fg, linv_fg))
    enc_energy_q = -jnp.mean(gmm_log_prob_chol(pts_q, phi_q, mu_q,
                                               chol_q, linv_q))

    kl = jnp.mean(kl_mvn_chol(mu_q, chol_q, mu_fg, chol_fg, linv_fg))
    samp_q_pts = jnp.transpose(feature_sampling_q, (1, 0, 2))              # [K, B, L]
    kl_loss_fg_q = kl - jnp.mean(gmm_log_prob_chol(samp_q_pts, phi_fg, mu_fg,
                                                   chol_fg, linv_fg))

    total_projection_loss = 1e-4 * (enc_energy_fg + enc_energy_q)
    total_kl_loss = 0.01 * kl_loss_fg_q + mse

    mu_foreground = [feature_sampling_fg[:, i, :][:, :, None, None]
                     for i in range(num_pro)]
    mu_query = [feature_sampling_q[:, i, :][:, :, None, None]
                for i in range(num_pro)]
    return mu_foreground, mu_query, total_projection_loss, total_kl_loss


# ----------------------------------------------------------------------------
# Deterministic parameter init (synthetic weights; no checkpoint load)
# Weights are stored pre-transposed (channel-first matmul form) and in bf16
# for the MXU path; biases stay f32 column vectors.
# ----------------------------------------------------------------------------
def init_params(c, latent_dim, k, hidden=16, seed=0):
    ce = latent_dim - 2
    assert ce == c, "cosine_similarity(fg_feature, enc_fg) requires c == latent_dim - 2"
    keys = jax.random.split(jax.random.PRNGKey(seed), 4)

    def s(key, shape, fan):
        return jax.random.normal(key, shape, jnp.float32) / jnp.sqrt(fan)

    return dict(
        wenc_t=s(keys[0], (ce, c), c).astype(jnp.bfloat16),
        benc=jnp.zeros((ce, 1), jnp.float32),
        wdec_t=s(keys[1], (c, ce), ce).astype(jnp.bfloat16),
        bdec=jnp.zeros((c, 1), jnp.float32),
        w1_t=s(keys[2], (hidden, latent_dim), latent_dim).astype(jnp.bfloat16),
        b1=jnp.zeros((hidden, 1), jnp.float32),
        w2_t=s(keys[3], (k, hidden), hidden).astype(jnp.bfloat16),
        b2=jnp.zeros((k, 1), jnp.float32),
    )


# TODO(synk): torch.distributions sampling / Cholesky / triangular solve / KL
# have no Pallas equivalent; they are implemented in plain JAX above.

if __name__ == "__main__":
    B, C, H, W = 2, 6, 32, 32
    LATENT_DIM = C + 2      # 8
    K = 4                   # num_pro

    root = jax.random.PRNGKey(0)
    k_sf, k_mask, k_qf, k_sample = jax.random.split(root, 4)

    support_feature = jax.random.normal(k_sf, (B, C, H, W), jnp.float32)
    support_mask = jax.nn.sigmoid(
        jax.random.normal(k_mask, (B, 1, 64, 64), jnp.float32))
    query_feature = jax.random.normal(k_qf, (B, C, H, W), jnp.float32)

    params = init_params(C, LATENT_DIM, K, hidden=16, seed=0)

    fwd = jax.jit(functools.partial(vgpmms_forward, num_pro=K))
    mu_fg_list, mu_q_list, proj_loss, kl_loss = fwd(
        support_feature, support_mask, query_feature, params, k_sample)

    jax.block_until_ready((mu_fg_list, mu_q_list, proj_loss, kl_loss))
    assert len(mu_fg_list) == K and len(mu_q_list) == K
    assert mu_fg_list[0].shape == (B, LATENT_DIM, 1, 1)
    assert proj_loss.shape == () and kl_loss.shape == ()
    print("KERNEL_OK")
</pallas_src>

<mosaic_0001>
module attributes {stable_mosaic.version = 11 : i64} {
  func.func @_vgpmm_fused_kernel(%arg0: i32, %arg1: i32, %arg2: memref<1x6x512xf32, #tpu.memory_space<vmem>>, %arg3: memref<6x6xbf16, #tpu.memory_space<vmem>>, %arg4: memref<6x1xf32, #tpu.memory_space<vmem>>, %arg5: memref<6x6xbf16, #tpu.memory_space<vmem>>, %arg6: memref<6x1xf32, #tpu.memory_space<vmem>>, %arg7: memref<16x8xbf16, #tpu.memory_space<vmem>>, %arg8: memref<16x1xf32, #tpu.memory_space<vmem>>, %arg9: memref<4x16xbf16, #tpu.memory_space<vmem>>, %arg10: memref<4x1xf32, #tpu.memory_space<vmem>>, %arg11: memref<1x8x512xf32, #tpu.memory_space<vmem>>, %arg12: memref<1x4x1xf32, #tpu.memory_space<vmem>>, %arg13: memref<1x4x8xf32, #tpu.memory_space<vmem>>, %arg14: memref<1x4x8x8xf32, #tpu.memory_space<vmem>>, %arg15: memref<1x1x1xf32, #tpu.memory_space<vmem>>, %arg16: memref<4x1xf32, #tpu.memory_space<vmem>>, %arg17: memref<4x8xf32, #tpu.memory_space<vmem>>, %arg18: memref<32x8xf32, #tpu.memory_space<vmem>>, %arg19: memref<1x1xf32, #tpu.memory_space<vmem>>) attributes {dimension_semantics = [#tpu.dimension_semantics<parallel>, #tpu.dimension_semantics<arbitrary>], iteration_bounds = array<i64: 4, 2>, scalar_prefetch = 0 : i64, scratch_operands = 4 : i64, tpu.core_type = #tpu.core_type<tc>, window_params = [{transform_indices = @transform_0, window_bounds = array<i64: 1, 6, 512>}, {pipeline_mode = #tpu.pipeline_mode<synchronous>, transform_indices = @transform_1, window_bounds = array<i64: 6, 6>}, {pipeline_mode = #tpu.pipeline_mode<synchronous>, transform_indices = @transform_2, window_bounds = array<i64: 6, 1>}, {pipeline_mode = #tpu.pipeline_mode<synchronous>, transform_indices = @transform_3, window_bounds = array<i64: 6, 6>}, {pipeline_mode = #tpu.pipeline_mode<synchronous>, transform_indices = @transform_4, window_bounds = array<i64: 6, 1>}, {pipeline_mode = #tpu.pipeline_mode<synchronous>, transform_indices = @transform_5, window_bounds = array<i64: 16, 8>}, {pipeline_mode = #tpu.pipeline_mode<synchronous>, transform_indices = @transform_6, window_bounds = array<i64: 16, 1>}, {pipeline_mode = #tpu.pipeline_mode<synchronous>, transform_indices = @transform_7, window_bounds = array<i64: 4, 16>}, {pipeline_mode = #tpu.pipeline_mode<synchronous>, transform_indices = @transform_8, window_bounds = array<i64: 4, 1>}, {transform_indices = @transform_9, window_bounds = array<i64: 1, 8, 512>}, {transform_indices = @transform_10, window_bounds = array<i64: 1, 4, 1>}, {transform_indices = @transform_11, window_bounds = array<i64: 1, 4, 8>}, {transform_indices = @transform_12, window_bounds = array<i64: 1, 4, 8, 8>}, {transform_indices = @transform_13, window_bounds = array<i64: 1, 1, 1>}]} {
    %c0_i32 = arith.constant 0 : i32
    %0 = arith.cmpi eq, %arg1, %c0_i32 : i32
    %1 = arith.extui %0 : i1 to i32
    %c0_i32_0 = arith.constant 0 : i32
    %2 = arith.cmpi ne, %1, %c0_i32_0 : i32
    scf.if %2 {
      %cst_61 = arith.constant 0.000000e+00 : f32
      %100 = vector.broadcast %cst_61 : f32 to vector<4x1xf32>
      %c0_62 = arith.constant 0 : index
      %c0_63 = arith.constant 0 : index
      %101 = vector.load %arg16[%c0_62, %c0_63] : memref<4x1xf32, #tpu.memory_space<vmem>>, vector<4x1xf32>
      tpu.vector_store %arg16[%c0_62, %c0_63], %100 {strides = array<i32>} : memref<4x1xf32, #tpu.memory_space<vmem>>, vector<4x1xf32>,
      %cst_64 = arith.constant 0.000000e+00 : f32
      %102 = vector.broadcast %cst_64 : f32 to vector<4x8xf32>
      %c0_65 = arith.constant 0 : index
      %c0_66 = arith.constant 0 : index
      %103 = vector.load %arg17[%c0_65, %c0_66] : memref<4x8xf32, #tpu.memory_space<vmem>>, vector<4x8xf32>
      tpu.vector_store %arg17[%c0_65, %c0_66], %102 {strides = array<i32>} : memref<4x8xf32, #tpu.memory_space<vmem>>, vector<4x8xf32>,
      %cst_67 = arith.constant 0.000000e+00 : f32
      %104 = vector.broadcast %cst_67 : f32 to vector<32x8xf32>
      %c0_68 = arith.constant 0 : index
      %c0_69 = arith.constant 0 : index
      %105 = vector.load %arg18[%c0_68, %c0_69] : memref<32x8xf32, #tpu.memory_space<vmem>>, vector<32x8xf32>
      tpu.vector_store %arg18[%c0_68, %c0_69], %104 {strides = array<i32>} : memref<32x8xf32, #tpu.memory_space<vmem>>, vector<32x8xf32>,
      %cst_70 = arith.constant 0.000000e+00 : f32
      %106 = vector.broadcast %cst_70 : f32 to vector<1x1xf32>
      %c0_71 = arith.constant 0 : index
      %c0_72 = arith.constant 0 : index
      %107 = vector.load %arg19[%c0_71, %c0_72] : memref<1x1xf32, #tpu.memory_space<vmem>>, vector<1x1xf32>
      tpu.vector_store %arg19[%c0_71, %c0_72], %106 {strides = array<i32>} : memref<1x1xf32, #tpu.memory_space<vmem>>, vector<1x1xf32>,
    } else {
    }
    %c0 = arith.constant 0 : index
    %c0_1 = arith.constant 0 : index
    %c0_2 = arith.constant 0 : index
    %3 = vector.load %arg2[%c0, %c0_1, %c0_2] : memref<1x6x512xf32, #tpu.memory_space<vmem>>, vector<1x6x512xf32>
    %4 = vector.shape_cast %3 : vector<1x6x512xf32> to vector<6x512xf32>
    %5 = arith.truncf %4 : vector<6x512xf32> to vector<6x512xbf16>
    %c0_3 = arith.constant 0 : index
    %c0_4 = arith.constant 0 : index
    %6 = vector.load %arg3[%c0_3, %c0_4] : memref<6x6xbf16, #tpu.memory_space<vmem>>, vector<6x6xbf16>
    %cst = arith.constant dense<0.000000e+00> : vector<6x512xf32>
    %7 = tpu.matmul %6, %5, %cst {dimension_numbers = #tpu.dot_dimension_numbers<[1], [0], [0], [1], [0, 0, 1, 1], [], []>} : vector<6x6xbf16>, vector<6x512xbf16>, vector<6x512xf32> -> vector<6x512xf32>
    %c0_5 = arith.constant 0 : index
    %c0_6 = arith.constant 0 : index
    %8 = vector.load %arg4[%c0_5, %c0_6] : memref<6x1xf32, #tpu.memory_space<vmem>>, vector<6x1xf32>
    %9 = vector.broadcast %8 : vector<6x1xf32> to vector<6x512xf32>
    %10 = arith.addf %7, %9 : vector<6x512xf32>
    %c0_7 = arith.constant 0 : index
    %c0_8 = arith.constant 0 : index
    %11 = vector.load %arg5[%c0_7, %c0_8] : memref<6x6xbf16, #tpu.memory_space<vmem>>, vector<6x6xbf16>
    %12 = arith.truncf %10 : vector<6x512xf32> to vector<6x512xbf16>
    %cst_9 = arith.constant dense<0.000000e+00> : vector<6x512xf32>
    %13 = tpu.matmul %11, %12, %cst_9 {dimension_numbers = #tpu.dot_dimension_numbers<[1], [0], [0], [1], [0, 0, 1, 1], [], []>} : vector<6x6xbf16>, vector<6x512xbf16>, vector<6x512xf32> -> vector<6x512xf32>
    %c0_10 = arith.constant 0 : index
    %c0_11 = arith.constant 0 : index
    %14 = vector.load %arg6[%c0_10, %c0_11] : memref<6x1xf32, #tpu.memory_space<vmem>>, vector<6x1xf32>
    %15 = vector.broadcast %14 : vector<6x1xf32> to vector<6x512xf32>
    %16 = arith.addf %13, %15 : vector<6x512xf32>
    %17 = arith.mulf %4, %10 : vector<6x512xf32>
    %cst_12 = arith.constant dense<0.000000e+00> : vector<512xf32>
    %18 = vector.multi_reduction <add>, %17, %cst_12 [0] : vector<6x512xf32> to vector<512xf32>
    %19 = vector.shape_cast %18 : vector<512xf32> to vector<1x512xf32>
    %20 = arith.mulf %4, %4 : vector<6x512xf32>
    %cst_13 = arith.constant dense<0.000000e+00> : vector<512xf32>
    %21 = vector.multi_reduction <add>, %20, %cst_13 [0] : vector<6x512xf32> to vector<512xf32>
    %22 = vector.shape_cast %21 : vector<512xf32> to vector<1x512xf32>
    %23 = arith.mulf %10, %10 : vector<6x512xf32>
    %cst_14 = arith.constant dense<0.000000e+00> : vector<512xf32>
    %24 = vector.multi_reduction <add>, %23, %cst_14 [0] : vector<6x512xf32> to vector<512xf32>
    %25 = vector.shape_cast %24 : vector<512xf32> to vector<1x512xf32>
    %cst_15 = arith.constant 1.000000e-16 : f32
    %26 = vector.broadcast %cst_15 : f32 to vector<1x512xf32>
    %27 = arith.maximumf %22, %26 : vector<1x512xf32>
    %28 = math.rsqrt %27 : vector<1x512xf32>
    %29 = arith.mulf %19, %28 : vector<1x512xf32>
    %cst_16 = arith.constant 1.000000e-16 : f32
    %30 = vector.broadcast %cst_16 : f32 to vector<1x512xf32>
    %31 = arith.maximumf %25, %30 : vector<1x512xf32>
    %32 = math.rsqrt %31 : vector<1x512xf32>
    %33 = arith.mulf %29, %32 : vector<1x512xf32>
    %34 = arith.subf %4, %16 : vector<6x512xf32>
    %35 = arith.mulf %34, %34 : vector<6x512xf32>
    %cst_17 = arith.constant dense<0.000000e+00> : vector<512xf32>
    %36 = vector.multi_reduction <add>, %35, %cst_17 [0] : vector<6x512xf32> to vector<512xf32>
    %37 = vector.shape_cast %36 : vector<512xf32> to vector<1x512xf32>
    %38 = math.sqrt %37 : vector<1x512xf32>
    %c0_18 = arith.constant 0 : index
    %c0_19 = arith.constant 0 : index
    %c0_20 = arith.constant 0 : index
    %39 = vector.load %arg11[%c0_18, %c0_19, %c0_20] : memref<1x8x512xf32, #tpu.memory_space<vmem>>, vector<1x6x512xf32>
    %40 = vector.shape_cast %39 : vector<1x6x512xf32> to vector<6x512xf32>
    %41 = vector.shape_cast %10 : vector<6x512xf32> to vector<1x6x512xf32>
    tpu.vector_store %arg11[%c0_18, %c0_19, %c0_20], %41 {strides = array<i32>} : memref<1x8x512xf32, #tpu.memory_space<vmem>>, vector<1x6x512xf32>,
    %c0_21 = arith.constant 0 : index
    %c6 = arith.constant 6 : index
    %c0_22 = arith.constant 0 : index
    %42 = vector.load %arg11[%c0_21, %c6, %c0_22] : memref<1x8x512xf32, #tpu.memory_space<vmem>>, vector<1x1x512xf32>
    %43 = vector.shape_cast %42 : vector<1x1x512xf32> to vector<1x512xf32>
    %44 = vector.shape_cast %33 : vector<1x512xf32> to vector<1x1x512xf32>
    tpu.vector_store %arg11[%c0_21, %c6, %c0_22], %44 {strides = array<i32>} : memref<1x8x512xf32, #tpu.memory_space<vmem>>, vector<1x1x512xf32>,
    %c0_23 = arith.constant 0 : index
    %c7 = arith.constant 7 : index
    %c0_24 = arith.constant 0 : index
    %45 = vector.load %arg11[%c0_23, %c7, %c0_24] : memref<1x8x512xf32, #tpu.memory_space<vmem>>, vector<1x1x512xf32>
    %46 = vector.shape_cast %45 : vector<1x1x512xf32> to vector<1x512xf32>
    %47 = vector.shape_cast %38 : vector<1x512xf32> to vector<1x1x512xf32>
    tpu.vector_store %arg11[%c0_23, %c7, %c0_24], %47 {strides = array<i32>} : memref<1x8x512xf32, #tpu.memory_space<vmem>>, vector<1x1x512xf32>,
    %c0_25 = arith.constant 0 : index
    %c0_26 = arith.constant 0 : index
    %c0_27 = arith.constant 0 : index
    %48 = vector.load %arg11[%c0_25, %c0_26, %c0_27] : memref<1x8x512xf32, #tpu.memory_space<vmem>>, vector<1x8x512xf32>
    %49 = vector.shape_cast %48 : vector<1x8x512xf32> to vector<8x512xf32>
    %50 = arith.truncf %49 : vector<8x512xf32> to vector<8x512xbf16>
    %c0_28 = arith.constant 0 : index
    %c0_29 = arith.constant 0 : index
    %51 = vector.load %arg7[%c0_28, %c0_29] : memref<16x8xbf16, #tpu.memory_space<vmem>>, vector<16x8xbf16>
    %cst_30 = arith.constant dense<0.000000e+00> : vector<16x512xf32>
    %52 = tpu.matmul %51, %50, %cst_30 {dimension_numbers = #tpu.dot_dimension_numbers<[1], [0], [0], [1], [0, 0, 1, 1], [], []>} : vector<16x8xbf16>, vector<8x512xbf16>, vector<16x512xf32> -> vector<16x512xf32>
    %c0_31 = arith.constant 0 : index
    %c0_32 = arith.constant 0 : index
    %53 = vector.load %arg8[%c0_31, %c0_32] : memref<16x1xf32, #tpu.memory_space<vmem>>, vector<16x1xf32>
    %54 = vector.broadcast %53 : vector<16x1xf32> to vector<16x512xf32>
    %55 = arith.addf %52, %54 : vector<16x512xf32>
    %56 = math.tanh %55 : vector<16x512xf32>
    %c0_33 = arith.constant 0 : index
    %c0_34 = arith.constant 0 : index
    %57 = vector.load %arg9[%c0_33, %c0_34] : memref<4x16xbf16, #tpu.memory_space<vmem>>, vector<4x16xbf16>
    %58 = arith.truncf %56 : vector<16x512xf32> to vector<16x512xbf16>
    %cst_35 = arith.constant dense<0.000000e+00> : vector<4x512xf32>
    %59 = tpu.matmul %57, %58, %cst_35 {dimension_numbers = #tpu.dot_dimension_numbers<[1], [0], [0], [1], [0, 0, 1, 1], [], []>} : vector<4x16xbf16>, vector<16x512xbf16>, vector<4x512xf32> -> vector<4x512xf32>
    %c0_36 = arith.constant 0 : index
    %c0_37 = arith.constant 0 : index
    %60 = vector.load %arg10[%c0_36, %c0_37] : memref<4x1xf32, #tpu.memory_space<vmem>>, vector<4x1xf32>
    %61 = vector.broadcast %60 : vector<4x1xf32> to vector<4x512xf32>
    %62 = arith.addf %59, %61 : vector<4x512xf32>
    %cst_38 = arith.constant dense<0xFF800000> : vector<512xf32>
    %63 = vector.multi_reduction <maximumf>, %62, %cst_38 [0] : vector<4x512xf32> to vector<512xf32>
    %64 = vector.shape_cast %63 : vector<512xf32> to vector<1x512xf32>
    %65 = vector.broadcast %64 : vector<1x512xf32> to vector<4x512xf32>
    %66 = arith.subf %62, %65 : vector<4x512xf32>
    %67 = math.exp %66 : vector<4x512xf32>
    %cst_39 = arith.constant dense<0.000000e+00> : vector<512xf32>
    %68 = vector.multi_reduction <add>, %67, %cst_39 [0] : vector<4x512xf32> to vector<512xf32>
    %69 = vector.shape_cast %68 : vector<512xf32> to vector<1x512xf32>
    %70 = tpu.reciprocal %69 {approx = true} : vector<1x512xf32> -> vector<1x512xf32>
    %71 = vector.broadcast %70 : vector<1x512xf32> to vector<4x512xf32>
    %72 = arith.mulf %67, %71 : vector<4x512xf32>
    %cst_40 = arith.constant dense<0.000000e+00> : vector<4xf32>
    %73 = vector.multi_reduction <add>, %72, %cst_40 [1] : vector<4x512xf32> to vector<4xf32>
    %74 = vector.shape_cast %73 : vector<4xf32> to vector<4x1xf32>
    %cst_41 = arith.constant dense<0.000000e+00> : vector<4x8xf32>
    %75 = tpu.matmul %72, %49, %cst_41 {dimension_numbers = #tpu.dot_dimension_numbers<[1], [1], [0], [0], [0, 0, 1, 0], [], []>} : vector<4x512xf32>, vector<8x512xf32>, vector<4x8xf32> -> vector<4x8xf32>
    %76 = vector.shape_cast %72 : vector<4x512xf32> to vector<4x1x512xf32>
    %77 = vector.shape_cast %49 : vector<8x512xf32> to vector<1x8x512xf32>
    %78 = vector.broadcast %76 : vector<4x1x512xf32> to vector<4x8x512xf32>
    %79 = vector.broadcast %77 : vector<1x8x512xf32> to vector<4x8x512xf32>
    %80 = arith.mulf %78, %79 : vector<4x8x512xf32>
    %81 = vector.shape_cast %80 : vector<4x8x512xf32> to vector<32x512xf32>
    %cst_42 = arith.constant dense<0.000000e+00> : vector<32x8xf32>
    %82 = tpu.matmul %81, %49, %cst_42 {dimension_numbers = #tpu.dot_dimension_numbers<[1], [1], [0], [0], [0, 0, 1, 0], [], []>} : vector<32x512xf32>, vector<8x512xf32>, vector<32x8xf32> -> vector<32x8xf32>
    %c0_43 = arith.constant 0 : index
    %c0_44 = arith.constant 0 : index
    %83 = vector.load %arg16[%c0_43, %c0_44] : memref<4x1xf32, #tpu.memory_space<vmem>>, vector<4x1xf32>
    %84 = arith.addf %83, %74 : vector<4x1xf32>
    %c0_45 = arith.constant 0 : index
    %c0_46 = arith.constant 0 : index
    %85 = vector.load %arg16[%c0_45, %c0_46] : memref<4x1xf32, #tpu.memory_space<vmem>>, vector<4x1xf32>
    tpu.vector_store %arg16[%c0_45, %c0_46], %84 {strides = array<i32>} : memref<4x1xf32, #tpu.memory_space<vmem>>, vector<4x1xf32>,
    %c0_47 = arith.constant 0 : index
    %c0_48 = arith.constant 0 : index
    %86 = vector.load %arg17[%c0_47, %c0_48] : memref<4x8xf32, #tpu.memory_space<vmem>>, vector<4x8xf32>
    %87 = arith.addf %86, %75 : vector<4x8xf32>
    %c0_49 = arith.constant 0 : index
    %c0_50 = arith.constant 0 : index
    %88 = vector.load %arg17[%c0_49, %c0_50] : memref<4x8xf32, #tpu.memory_space<vmem>>, vector<4x8xf32>
    tpu.vector_store %arg17[%c0_49, %c0_50], %87 {strides = array<i32>} : memref<4x8xf32, #tpu.memory_space<vmem>>, vector<4x8xf32>,
    %c0_51 = arith.constant 0 : index
    %c0_52 = arith.constant 0 : index
    %89 = vector.load %arg18[%c0_51, %c0_52] : memref<32x8xf32, #tpu.memory_space<vmem>>, vector<32x8xf32>
    %90 = arith.addf %89, %82 : vector<32x8xf32>
    %c0_53 = arith.constant 0 : index
    %c0_54 = arith.constant 0 : index
    %91 = vector.load %arg18[%c0_53, %c0_54] : memref<32x8xf32, #tpu.memory_space<vmem>>, vector<32x8xf32>
    tpu.vector_store %arg18[%c0_53, %c0_54], %90 {strides = array<i32>} : memref<32x8xf32, #tpu.memory_space<vmem>>, vector<32x8xf32>,
    %c0_55 = arith.constant 0 : index
    %c0_56 = arith.constant 0 : index
    %92 = vector.load %arg19[%c0_55, %c0_56] : memref<1x1xf32, #tpu.memory_space<vmem>>, vector<1x1xf32>
    %cst_57 = arith.constant dense<0.000000e+00> : vector<1xf32>
    %93 = vector.multi_reduction <add>, %37, %cst_57 [1] : vector<1x512xf32> to vector<1xf32>
    %94 = vector.shape_cast %93 : vector<1xf32> to vector<1x1xf32>
    %95 = arith.addf %92, %94 : vector<1x1xf32>
    %c0_58 = arith.constant 0 : index
    %c0_59 = arith.constant 0 : index
    %96 = vector.load %arg19[%c0_58, %c0_59] : memref<1x1xf32, #tpu.memory_space<vmem>>, vector<1x1xf32>
    tpu.vector_store %arg19[%c0_58, %c0_59], %95 {strides = array<i32>} : memref<1x1xf32, #tpu.memory_space<vmem>>, vector<1x1xf32>,
    %c1_i32 = arith.constant 1 : i32
    %97 = arith.cmpi eq, %arg1, %c1_i32 : i32
    %98 = arith.extui %97 : i1 to i32
    %c0_i32_60 = arith.constant 0 : i32
    %99 = arith.cmpi ne, %98, %c0_i32_60 : i32
    scf.if %99 {
      %c0_61 = arith.constant 0 : index
      %c0_62 = arith.constant 0 : index
      %100 = vector.load %arg16[%c0_61, %c0_62] : memref<4x1xf32, #tpu.memory_space<vmem>>, vector<4x1xf32>
      %cst_63 = arith.constant 9.99999996E-13 : f32
      %101 = vector.broadcast %cst_63 : f32 to vector<4x1xf32>
      %102 = arith.addf %100, %101 : vector<4x1xf32>
      %103 = tpu.reciprocal %102 {approx = true} : vector<4x1xf32> -> vector<4x1xf32>
      %cst_64 = arith.constant 9.765625E-4 : f32
      %104 = vector.broadcast %cst_64 : f32 to vector<4x1xf32>
      %105 = arith.mulf %100, %104 : vector<4x1xf32>
      %c0_65 = arith.constant 0 : index
      %c0_66 = arith.constant 0 : index
      %106 = vector.load %arg17[%c0_65, %c0_66] : memref<4x8xf32, #tpu.memory_space<vmem>>, vector<4x8xf32>
      %107 = vector.broadcast %103 : vector<4x1xf32> to vector<4x8xf32>
      %108 = arith.mulf %106, %107 : vector<4x8xf32>
      %c0_67 = arith.constant 0 : index
      %c0_68 = arith.constant 0 : index
      %109 = vector.load %arg18[%c0_67, %c0_68] : memref<32x8xf32, #tpu.memory_space<vmem>>, vector<32x8xf32>
      %110 = vector.shape_cast %109 : vector<32x8xf32> to vector<4x8x8xf32>
      %111 = vector.shape_cast %103 : vector<4x1xf32> to vector<4x1x1xf32>
      %112 = vector.broadcast %111 : vector<4x1x1xf32> to vector<4x8x8xf32>
      %113 = arith.mulf %110, %112 : vector<4x8x8xf32>
      %114 = vector.shape_cast %108 : vector<4x8xf32> to vector<4x8x1xf32>
      %115 = vector.shape_cast %108 : vector<4x8xf32> to vector<4x1x8xf32>
      %116 = vector.broadcast %114 : vector<4x8x1xf32> to vector<4x8x8xf32>
      %117 = vector.broadcast %115 : vector<4x1x8xf32> to vector<4x8x8xf32>
      %118 = arith.mulf %116, %117 : vector<4x8x8xf32>
      %119 = arith.subf %113, %118 : vector<4x8x8xf32>
      %c0_69 = arith.constant 0 : index
      %c0_70 = arith.constant 0 : index
      %c0_71 = arith.constant 0 : index
      %120 = vector.load %arg12[%c0_69, %c0_70, %c0_71] : memref<1x4x1xf32, #tpu.memory_space<vmem>>, vector<1x4x1xf32>
      %121 = vector.shape_cast %120 : vector<1x4x1xf32> to vector<4x1xf32>
      %122 = vector.shape_cast %105 : vector<4x1xf32> to vector<1x4x1xf32>
      tpu.vector_store %arg12[%c0_69, %c0_70, %c0_71], %122 {strides = array<i32>} : memref<1x4x1xf32, #tpu.memory_space<vmem>>, vector<1x4x1xf32>,
      %c0_72 = arith.constant 0 : index
      %c0_73 = arith.constant 0 : index
      %c0_74 = arith.constant 0 : index
      %123 = vector.load %arg13[%c0_72, %c0_73, %c0_74] : memref<1x4x8xf32, #tpu.memory_space<vmem>>, vector<1x4x8xf32>
      %124 = vector.shape_cast %123 : vector<1x4x8xf32> to vector<4x8xf32>
      %125 = vector.shape_cast %108 : vector<4x8xf32> to vector<1x4x8xf32>
      tpu.vector_store %arg13[%c0_72, %c0_73, %c0_74], %125 {strides = array<i32>} : memref<1x4x8xf32, #tpu.memory_space<vmem>>, vector<1x4x8xf32>,
      %c0_75 = arith.constant 0 : index
      %c0_76 = arith.constant 0 : index
      %c0_77 = arith.constant 0 : index
      %c0_78 = arith.constant 0 : index
      %126 = vector.load %arg14[%c0_75, %c0_76, %c0_77, %c0_78] : memref<1x4x8x8xf32, #tpu.memory_space<vmem>>, vector<1x4x8x8xf32>
      %127 = vector.shape_cast %126 : vector<1x4x8x8xf32> to vector<4x8x8xf32>
      %128 = vector.shape_cast %119 : vector<4x8x8xf32> to vector<1x4x8x8xf32>
      tpu.vector_store %arg14[%c0_75, %c0_76, %c0_77, %c0_78], %128 {strides = array<i32>} : memref<1x4x8x8xf32, #tpu.memory_space<vmem>>, vector<1x4x8x8xf32>,
      %c0_79 = arith.constant 0 : index
      %c0_80 = arith.constant 0 : index
      %129 = vector.load %arg19[%c0_79, %c0_80] : memref<1x1xf32, #tpu.memory_space<vmem>>, vector<1x1xf32>
      %c0_81 = arith.constant 0 : index
      %c0_82 = arith.constant 0 : index
      %c0_83 = arith.constant 0 : index
      %130 = vector.load %arg15[%c0_81, %c0_82, %c0_83] : memref<1x1x1xf32, #tpu.memory_space<vmem>>, vector<1x1x1xf32>
      %131 = vector.shape_cast %130 : vector<1x1x1xf32> to vector<1x1xf32>
      %132 = vector.shape_cast %129 : vector<1x1xf32> to vector<1x1x1xf32>
      tpu.vector_store %arg15[%c0_81, %c0_82, %c0_83], %132 {strides = array<i32>} : memref<1x1x1xf32, #tpu.memory_space<vmem>>, vector<1x1x1xf32>,
    } else {
    }
    return
  }
  func.func @transform_0(%arg0: i32, %arg1: i32) -> (i32, i32, i32) {
    %c0_i32 = arith.constant 0 : i32
    %c0_i32_0 = arith.constant 0 : i32
    return %arg0, %c0_i32, %arg1 : i32, i32, i32
  }
  func.func @transform_1(%arg0: i32, %arg1: i32) -> (i32, i32) {
    %c0_i32 = arith.constant 0 : i32
    %c0_i32_0 = arith.constant 0 : i32
    %c0_i32_1 = arith.constant 0 : i32
    return %c0_i32, %c0_i32_0 : i32, i32
  }
  func.func @transform_2(%arg0: i32, %arg1: i32) -> (i32, i32) {
    %c0_i32 = arith.constant 0 : i32
    %c0_i32_0 = arith.constant 0 : i32
    %c0_i32_1 = arith.constant 0 : i32
    return %c0_i32, %c0_i32_0 : i32, i32
  }
  func.func @transform_3(%arg0: i32, %arg1: i32) -> (i32, i32) {
    %c0_i32 = arith.constant 0 : i32
    %c0_i32_0 = arith.constant 0 : i32
    %c0_i32_1 = arith.constant 0 : i32
    return %c0_i32, %c0_i32_0 : i32, i32
  }
  func.func @transform_4(%arg0: i32, %arg1: i32) -> (i32, i32) {
    %c0_i32 = arith.constant 0 : i32
    %c0_i32_0 = arith.constant 0 : i32
    %c0_i32_1 = arith.constant 0 : i32
    return %c0_i32, %c0_i32_0 : i32, i32
  }
  func.func @transform_5(%arg0: i32, %arg1: i32) -> (i32, i32) {
    %c0_i32 = arith.constant 0 : i32
    %c0_i32_0 = arith.constant 0 : i32
    %c0_i32_1 = arith.constant 0 : i32
    return %c0_i32, %c0_i32_0 : i32, i32
  }
  func.func @transform_6(%arg0: i32, %arg1: i32) -> (i32, i32) {
    %c0_i32 = arith.constant 0 : i32
    %c0_i32_0 = arith.constant 0 : i32
    %c0_i32_1 = arith.constant 0 : i32
    return %c0_i32, %c0_i32_0 : i32, i32
  }
  func.func @transform_7(%arg0: i32, %arg1: i32) -> (i32, i32) {
    %c0_i32 = arith.constant 0 : i32
    %c0_i32_0 = arith.constant 0 : i32
    %c0_i32_1 = arith.constant 0 : i32
    return %c0_i32, %c0_i32_0 : i32, i32
  }
  func.func @transform_8(%arg0: i32, %arg1: i32) -> (i32, i32) {
    %c0_i32 = arith.constant 0 : i32
    %c0_i32_0 = arith.constant 0 : i32
    %c0_i32_1 = arith.constant 0 : i32
    return %c0_i32, %c0_i32_0 : i32, i32
  }
  func.func @transform_9(%arg0: i32, %arg1: i32) -> (i32, i32, i32) {
    %c0_i32 = arith.constant 0 : i32
    %c0_i32_0 = arith.constant 0 : i32
    return %arg0, %c0_i32, %arg1 : i32, i32, i32
  }
  func.func @transform_10(%arg0: i32, %arg1: i32) -> (i32, i32, i32) {
    %c0_i32 = arith.constant 0 : i32
    %c0_i32_0 = arith.constant 0 : i32
    %c0_i32_1 = arith.constant 0 : i32
    return %arg0, %c0_i32, %c0_i32_0 : i32, i32, i32
  }
  func.func @transform_11(%arg0: i32, %arg1: i32) -> (i32, i32, i32) {
    %c0_i32 = arith.constant 0 : i32
    %c0_i32_0 = arith.constant 0 : i32
    %c0_i32_1 = arith.constant 0 : i32
    return %arg0, %c0_i32, %c0_i32_0 : i32, i32, i32
  }
  func.func @transform_12(%arg0: i32, %arg1: i32) -> (i32, i32, i32, i32) {
    %c0_i32 = arith.constant 0 : i32
    %c0_i32_0 = arith.constant 0 : i32
    %c0_i32_1 = arith.constant 0 : i32
    %c0_i32_2 = arith.constant 0 : i32
    return %arg0, %c0_i32, %c0_i32_0, %c0_i32_1 : i32, i32, i32, i32
  }
  func.func @transform_13(%arg0: i32, %arg1: i32) -> (i32, i32, i32) {
    %c0_i32 = arith.constant 0 : i32
    %c0_i32_0 = arith.constant 0 : i32
    %c0_i32_1 = arith.constant 0 : i32
    return %arg0, %c0_i32, %c0_i32_0 : i32, i32, i32
  }
}

</mosaic_0001>

<bundles_post_ra>
// kernel: custom-call.20
= control target key start
LH: loop header
LB: loop body
LE: loop exit
PB: predicated region body
PF: predicated region fallthrough
CT: control target
= control target key end

     0   :  { %s524_s6 = smov 0   ;;  %s526_s7 = smov 0   ;;  %s626_s0 = inlined_call_operand.vmem [shape: f32[2,4,8,8], index: 0, kind: input, shape index: {}]   ;;  %s627_s1 = inlined_call_operand.vmem [shape: f32[2,4,8,8], index: 1, kind: output, shape index: {}]  }
   0x1   :  { %s528_s8 = smov 0   ;;  %s530_s9 = smov 0  }
   0x2   :  { %s532_s10 = smov 0  }
   0x3 LB: > { %s388_s11 = sadd.s32 4294967295, %s511_s10   ;;  %s29_s12 = sadd.s32 1, %s503_s8  ;;  %s511_s10 = sphi %s532_s10, %s7_s10   ;;  %s507_s9 = sphi %s530_s9, %s631_s9   ;;  %s503_s8 = sphi %s528_s8, %s630_s8   ;;  %s499_s7 = sphi %s526_s7, %s629_s7   ;;  %s495_s6 = sphi %s524_s6, %s628_s6  }
   0x4   : > { %p31_p0 = scmp.ge.s32.totalorder %s29_s12, 4  ;;  %s33_s13 = sadd.s32 1, %s507_s9 }
   0x5   : > { %p390_p2 = scmp.ge.s32.totalorder %s511_s10, 8 }
   0x6   : > { %s633_s12 = smov (%p31_p0, %s29_s12), 0  ;;  %s635_s13 = smov (!%p31_p0, %s33_s13), %s507_s9 }
   0x7   : > { %p35_p1 = scmp.ge.s32.totalorder %s635_s13, 2  ;;  %47 = sbr.rel (%p390_p2) target bundleno = 15 (0xf), region = 16 }
   0x8   : > { %s49_s14 = sand.u32 (!%p390_p2), 1, %s511_s10   ;;  %s392_s15 = sshll.u32 (!%p390_p2), %s507_s9, 2 }
   0x9   : > { %s637_s13 = smov (%p35_p1, %s635_s13), 0  ;;  %s391_s16 = sshll.u32 (!%p390_p2), %s49_s14, 3 }
   0xa   : > { %s55_s17 = sadd.s32 (!%p390_p2), %s503_s8, %s392_s15  ;;  %s51_s22 = scalar_lea.vmem (!%p390_p2), [#allocation0], %s391_s16 }
   0xb   : > { %s393_s18 = sshll.u32 (!%p390_p2), %s55_s17, 3 }
   0xc   : > { %s57_s21 = scalar_lea.vmem (!%p390_p2), %s626_s0, %s393_s18 }
   0xd   : > { %v85_v0 = vld [vmem:[%s57_s21] sm:$0xff] (!%p390_p2) }
   0xe   : > { %86 = vst [vmem:[%s51_s22] sm:$0xff] %v85_v0 }
   0xf PF: > { %p394_p3 = scmp.ge.s32.totalorder %s511_s10, 1  ;;  %p91_p4 = scmp.lt.s32.totalorder %s511_s10, 9 }
  0x11   : > { %p92_p5 = pnand %p394_p3, %p91_p4 }
  0x12   : > { %s98_s23 = sand.u32 (!%p92_p5), 1, %s388_s11   ;;  %v513_v1 = vmov (!%p92_p5), 0.0   ;;  %vm110_vm0 = vcmask (!%p92_p5), 7168   ;;  %vm128_vm1 = vcmask (!%p92_p5), 15368   ;;  %vm145_vm2 = vcmask (!%p92_p5), 1047553   ;;  %s412_s27 = sshll.u32 (!%p92_p5), %s499_s7, 2 }
  0x13   : > { %95 = sbr.rel (%p92_p5) target bundleno = 1380 (0x564), region = 54  ;;  %s395_s24 = sshll.u32 (!%p92_p5), %s98_s23, 3  ;;  %vm146_vm3 = vmand (!%p92_p5), %vm128_vm1, %vm145_vm2  ;;  %vm150_vm4 = vcmask (!%p92_p5), 23568   ;;  %vm167_vm5 = vcmask (!%p92_p5), 1047554   ;;  %vm172_vm7 = vcmask (!%p92_p5), 31768   ;;  %vm189_vm8 = vcmask (!%p92_p5), 1047555  }
  0x14   : > { %s566_s25 = scalar_lea.vmem (!%p92_p5), [#allocation1], %s395_s24  ;;  %s570_s26 = scalar_lea.vmem (!%p92_p5), [#allocation0], %s395_s24  ;;  %vm168_vm6 = vmand (!%p92_p5), %vm150_vm4, %vm167_vm5  ;;  %vm194_vm10 = vcmask (!%p92_p5), 39968   ;;  %vm211_vm11 = vcmask (!%p92_p5), 1047556   ;;  %vm216_vm13 = vcmask (!%p92_p5), 48168   ;;  %vm233_vm14 = vcmask (!%p92_p5), 1047557  }
  0x15   : > { %109 = vst [vmem:[%s566_s25] sm:$0xff] (!%p92_p5), %v513_v1  ;;  %v112_v5 = vld [vmem:[%s570_s26] ss:$0 sm:$0xff] (!%p92_p5)  ;;  %v398_v17 = vld [vmem:[%s570_s26 + $0x1] ss:$0 sm:$0xff] (!%p92_p5)  ;;  %v400_v29 = vld [vmem:[%s570_s26 + $0x2] ss:$0 sm:$0xff] (!%p92_p5)  ;;  %s289_s28 = sadd.s32 (!%p92_p5), %s495_s6, %s412_s27 }
  0x16   : > { %v574_v9 = vld [vmem:[%s570_s26] sm:$0xff] (!%p92_p5)  ;;  %vm190_vm9 = vmand (!%p92_p5), %vm172_vm7, %vm189_vm8  ;;  %vm255_vm1 = vcmask (!%p92_p5), 1047558   ;;  %vm277_vm4 = vcmask (!%p92_p5), 1047559   ;;  %s413_s29 = sshll.u32 (!%p92_p5), %s289_s28, 3 }
  0x17   : > { %v402_v41 = vld [vmem:[%s570_s26 + $0x3] ss:$0 sm:$0xff] (!%p92_p5)  ;;  %v404_v53 = vld [vmem:[%s570_s26 + $0x4] ss:$0 sm:$0xff] (!%p92_p5)  ;;  %vm212_vm12 = vmand (!%p92_p5), %vm194_vm10, %vm211_vm11  ;;  %s291_s3 = scalar_lea.vmem (!%p92_p5), %s627_s1, %s413_s29 }
  0x18   : > { %v406_v1 = vld [vmem:[%s570_s26 + $0x5] ss:$0 sm:$0xff] (!%p92_p5)  ;;  %vm234_vm15 = vmand (!%p92_p5), %vm216_vm13, %vm233_vm14 }
  0x1c   : > { %v111_v2 = vld [vmem:[%s566_s25] ss:$0 sm:$0xff] }
  0x1d   : > { %v113_v3 = vmul.f32 %v111_v2, %v111_v2  ;;  %v120_v4 = vmul.f32 0.0, %v111_v2 }
  0x1f   : > { %114 = vadd.xlane.f32.xlu0 %v113_v3 }
  0x23   : > { %121 = vadd.xlane.f32.xlu0 %v120_v4 }
  0xac   : > { %v115_v6 = vpop.xlane.xlu0 %114 }
  0xad   : > { %v116_v7 = vsub.f32 %v112_v5, %v115_v6 }
  0xaf   : > { %457 = vrsqrt.f32 %v116_v7 }
  0xb0   : > { %v122_v8 = vpop.xlane.xlu0 %121 }
  0xb1   : > { %v123_v10 = vsub.f32 %v574_v9, %v122_v8 }
  0xb9   : > { %v458_v11 = vpop.eup %457 }
  0xba   : > { %v124_v12 = vmul.f32 %v458_v11, %v123_v10 }
  0xbc   : > { %v125_v13 = vsel %vm110_vm0, %v124_v12, 0.0  ;;  %vm238_vm0 = vcmask 56368  }
  0xbd   : > { %127 = vst [vmem:[%s566_s25] sm:$0xff] %v125_v13  ;;  %vm256_vm2 = vmand %vm238_vm0, %vm255_vm1 }
  0xc4   : > { %v397_v14 = vld [vmem:[%s566_s25 + $0x1] ss:$0 sm:$0xff] }
  0xc5   : > { %v133_v15 = vmul.f32 %v397_v14, %v397_v14  ;;  %v140_v16 = vmul.f32 %v397_v14, %v125_v13  ;;  %v408_v14 = vld [vmem:[%s570_s26 + $0x6] ss:$0 sm:$0xff] }
  0xc7   : > { %134 = vadd.xlane.f32.xlu1 %v133_v15 }
  0xcb   : > { %141 = vadd.xlane.f32.xlu1 %v140_v16 }
 0x154   : > { %v135_v18 = vpop.xlane.xlu1 %134 }
 0x155   : > { %v136_v19 = vsub.f32 %v398_v17, %v135_v18 }
 0x157   : > { %459 = vrsqrt.f32 %v136_v19 }
 0x158   : > { %v142_v20 = vpop.xlane.xlu1 %141 }
 0x159   : > { %v143_v21 = vsub.f32 %v574_v9, %v142_v20 }
 0x161   : > { %v460_v22 = vpop.eup %459 }
 0x162   : > { %v144_v23 = vmul.f32 %v460_v22, %v143_v21 }
 0x164   : > { %v147_v24 = vsel %vm146_vm3, %v144_v23, 0.0  ;;  %vm260_vm3 = vcmask 64568  }
 0x165   : > { %v148_v25 = vadd.f32 %v147_v24, %v125_v13  ;;  %vm278_vm5 = vmand %vm260_vm3, %vm277_vm4 }
 0x167   : > { %149 = vst [vmem:[%s566_s25] sm:$0xff] %v148_v25 }
 0x16e   : > { %v399_v26 = vld [vmem:[%s566_s25 + $0x2] ss:$0 sm:$0xff] }
 0x16f   : > { %v162_v27 = vmul.f32 %v399_v26, %v148_v25  ;;  %v155_v28 = vmul.f32 %v399_v26, %v399_v26  ;;  %v410_v26 = vld [vmem:[%s570_s26 + $0x7] ss:$0 sm:$0xff] }
 0x171   : > { %163 = vadd.xlane.f32.xlu1 %v162_v27  ;;  %156 = vadd.xlane.f32.xlu0 %v155_v28 }
 0x1fe   : > { %v157_v30 = vpop.xlane.xlu0 %156  ;;  %v164_v32 = vpop.xlane.xlu1 %163 }
 0x1ff   : > { %v158_v31 = vsub.f32 %v400_v29, %v157_v30  ;;  %v165_v33 = vsub.f32 %v574_v9, %v164_v32 }
 0x201   : > { %461 = vrsqrt.f32 %v158_v31 }
 0x20b   : > { %v462_v34 = vpop.eup %461 }
 0x20c   : > { %v166_v35 = vmul.f32 %v462_v34, %v165_v33 }
 0x20e   : > { %v169_v36 = vsel %vm168_vm6, %v166_v35, 0.0 }
 0x20f   : > { %v170_v37 = vadd.f32 %v169_v36, %v148_v25 }
 0x211   : > { %171 = vst [vmem:[%s566_s25] sm:$0xff] %v170_v37 }
 0x218   : > { %v401_v38 = vld [vmem:[%s566_s25 + $0x3] ss:$0 sm:$0xff] }
 0x219   : > { %v184_v39 = vmul.f32 %v401_v38, %v170_v37  ;;  %v177_v40 = vmul.f32 %v401_v38, %v401_v38 }
 0x21b   : > { %185 = vadd.xlane.f32.xlu1 %v184_v39  ;;  %178 = vadd.xlane.f32.xlu0 %v177_v40 }
 0x2a8   : > { %v179_v42 = vpop.xlane.xlu0 %178  ;;  %v186_v44 = vpop.xlane.xlu1 %185 }
 0x2a9   : > { %v180_v43 = vsub.f32 %v402_v41, %v179_v42  ;;  %v187_v45 = vsub.f32 %v574_v9, %v186_v44 }
 0x2ab   : > { %463 = vrsqrt.f32 %v180_v43 }
 0x2b5   : > { %v464_v46 = vpop.eup %463 }
 0x2b6   : > { %v188_v47 = vmul.f32 %v464_v46, %v187_v45 }
 0x2b8   : > { %v191_v48 = vsel %vm190_vm9, %v188_v47, 0.0 }
 0x2b9   : > { %v192_v49 = vadd.f32 %v191_v48, %v170_v37 }
 0x2bb   : > { %193 = vst [vmem:[%s566_s25] sm:$0xff] %v192_v49 }
 0x2c2   : > { %v403_v50 = vld [vmem:[%s566_s25 + $0x4] ss:$0 sm:$0xff] }
 0x2c3   : > { %v206_v51 = vmul.f32 %v403_v50, %v192_v49  ;;  %v199_v52 = vmul.f32 %v403_v50, %v403_v50 }
 0x2c5   : > { %207 = vadd.xlane.f32.xlu1 %v206_v51  ;;  %200 = vadd.xlane.f32.xlu0 %v199_v52 }
 0x352   : > { %v201_v54 = vpop.xlane.xlu0 %200  ;;  %v208_v56 = vpop.xlane.xlu1 %207 }
 0x353   : > { %v202_v55 = vsub.f32 %v404_v53, %v201_v54  ;;  %v209_v57 = vsub.f32 %v574_v9, %v208_v56 }
 0x355   : > { %465 = vrsqrt.f32 %v202_v55 }
 0x35f   : > { %v466_v58 = vpop.eup %465 }
 0x360   : > { %v210_v59 = vmul.f32 %v466_v58, %v209_v57 }
 0x362   : > { %v213_v60 = vsel %vm212_vm12, %v210_v59, 0.0 }
 0x363   : > { %v214_v61 = vadd.f32 %v213_v60, %v192_v49 }
 0x365   : > { %215 = vst [vmem:[%s566_s25] sm:$0xff] %v214_v61 }
 0x36c   : > { %v405_v62 = vld [vmem:[%s566_s25 + $0x5] ss:$0 sm:$0xff] }
 0x36d   : > { %v228_v63 = vmul.f32 %v405_v62, %v214_v61  ;;  %v221_v0 = vmul.f32 %v405_v62, %v405_v62 }
 0x36f   : > { %229 = vadd.xlane.f32.xlu1 %v228_v63  ;;  %222 = vadd.xlane.f32.xlu0 %v221_v0 }
 0x3fc   : > { %v223_v2 = vpop.xlane.xlu0 %222  ;;  %v230_v4 = vpop.xlane.xlu1 %229 }
 0x3fd   : > { %v224_v3 = vsub.f32 %v406_v1, %v223_v2  ;;  %v231_v5 = vsub.f32 %v574_v9, %v230_v4 }
 0x3ff   : > { %467 = vrsqrt.f32 %v224_v3 }
 0x409   : > { %v468_v6 = vpop.eup %467 }
 0x40a   : > { %v232_v7 = vmul.f32 %v468_v6, %v231_v5 }
 0x40c   : > { %v235_v8 = vsel %vm234_vm15, %v232_v7, 0.0 }
 0x40d   : > { %v236_v10 = vadd.f32 %v235_v8, %v214_v61 }
 0x40f   : > { %237 = vst [vmem:[%s566_s25] sm:$0xff] %v236_v10 }
 0x416   : > { %v407_v11 = vld [vmem:[%s566_s25 + $0x6] ss:$0 sm:$0xff] }
 0x417   : > { %v250_v12 = vmul.f32 %v407_v11, %v236_v10  ;;  %v243_v13 = vmul.f32 %v407_v11, %v407_v11 }
 0x419   : > { %251 = vadd.xlane.f32.xlu1 %v250_v12  ;;  %244 = vadd.xlane.f32.xlu0 %v243_v13 }
 0x4a6   : > { %v245_v15 = vpop.xlane.xlu0 %244  ;;  %v252_v17 = vpop.xlane.xlu1 %251 }
 0x4a7   : > { %v246_v16 = vsub.f32 %v408_v14, %v245_v15  ;;  %v253_v18 = vsub.f32 %v574_v9, %v252_v17 }
 0x4a9   : > { %469 = vrsqrt.f32 %v246_v16 }
 0x4b3   : > { %v470_v19 = vpop.eup %469 }
 0x4b4   : > { %v254_v20 = vmul.f32 %v470_v19, %v253_v18 }
 0x4b6   : > { %v257_v21 = vsel %vm256_vm2, %v254_v20, 0.0 }
 0x4b7   : > { %v258_v22 = vadd.f32 %v257_v21, %v236_v10 }
 0x4b9   : > { %259 = vst [vmem:[%s566_s25] sm:$0xff] %v258_v22 }
 0x4c0   : > { %v409_v23 = vld [vmem:[%s566_s25 + $0x7] ss:$0 sm:$0xff] }
 0x4c1   : > { %v272_v24 = vmul.f32 %v409_v23, %v258_v22  ;;  %v265_v25 = vmul.f32 %v409_v23, %v409_v23 }
 0x4c3   : > { %273 = vadd.xlane.f32.xlu1 %v272_v24  ;;  %266 = vadd.xlane.f32.xlu0 %v265_v25 }
 0x550   : > { %v267_v27 = vpop.xlane.xlu0 %266  ;;  %v274_v29 = vpop.xlane.xlu1 %273 }
 0x551   : > { %v268_v28 = vsub.f32 %v410_v26, %v267_v27  ;;  %v275_v30 = vsub.f32 %v574_v9, %v274_v29 }
 0x553   : > { %471 = vrsqrt.f32 %v268_v28 }
 0x55d   : > { %v472_v31 = vpop.eup %471 }
 0x55e   : > { %v276_v32 = vmul.f32 %v472_v31, %v275_v30 }
 0x560   : > { %v279_v33 = vsel %vm278_vm5, %v276_v32, 0.0 }
 0x561   : > { %v280_v34 = vadd.f32 %v279_v33, %v258_v22 }
 0x563   : > { %281 = vst [vmem:[%s566_s25] sm:$0xff] %v280_v34  ;;  %320 = vst [vmem:[%s291_s3] sm:$0xff] %v280_v34 }
 0x564 PF: > { %s7_s10 = sadd.s32 1, %s511_s10   ;;  %s628_s6 = smov %s503_s8 }
 0x565   : > { %p4_p6 = scmp.ge.s32.totalorder %s7_s10, 10   ;;  %s629_s7 = smov %s507_s9 }
 0x566   : > { %s630_s8 = smov %s633_s12  ;;  %s631_s9 = smov %s637_s13 }
 0x567   :  { %6 = sbr.rel (!%p4_p6) target bundleno = 3 (0x3), region = 132 }

// kernel: custom-call.22
= control target key start
LH: loop header
LB: loop body
LE: loop exit
PB: predicated region body
PF: predicated region fallthrough
CT: control target
= control target key end

     0   :  { %s440_s6 = smov 0   ;;  %s442_s7 = smov 0   ;;  %s520_s0 = inlined_call_operand.vmem [shape: f32[2,4,1,8,8], index: 0, kind: input, shape index: {}]   ;;  %s521_s1 = inlined_call_operand.vmem [shape: f32[2,4,1,8,8], index: 1, kind: output, shape index: {}]  }
   0x1   :  { %s444_s8 = smov 0   ;;  %s446_s9 = smov 0  }
   0x2   :  { %s448_s10 = smov 0  }
   0x3 LB: > { %s332_s11 = sadd.s32 4294967295, %s427_s10   ;;  %s36_s12 = sadd.s32 1, %s419_s8  ;;  %s427_s10 = sphi %s448_s10, %s7_s10   ;;  %s423_s9 = sphi %s446_s9, %s525_s9   ;;  %s419_s8 = sphi %s444_s8, %s524_s8   ;;  %s415_s7 = sphi %s442_s7, %s523_s7   ;;  %s411_s6 = sphi %s440_s6, %s522_s6  }
   0x4   : > { %p38_p0 = scmp.ge.s32.totalorder %s36_s12, 4  ;;  %s40_s13 = sadd.s32 1, %s423_s9 }
   0x5   : > { %p334_p2 = scmp.ge.s32.totalorder %s427_s10, 8 }
   0x6   : > { %s527_s12 = smov (%p38_p0, %s36_s12), 0  ;;  %s529_s13 = smov (!%p38_p0, %s40_s13), %s423_s9 }
   0x7   : > { %p42_p1 = scmp.ge.s32.totalorder %s529_s13, 2  ;;  %54 = sbr.rel (%p334_p2) target bundleno = 15 (0xf), region = 16 }
   0x8   : > { %s56_s14 = sand.u32 (!%p334_p2), 1, %s427_s10   ;;  %s336_s15 = sshll.u32 (!%p334_p2), %s423_s9, 2 }
   0x9   : > { %s531_s13 = smov (%p42_p1, %s529_s13), 0  ;;  %s335_s16 = sshll.u32 (!%p334_p2), %s56_s14, 3 }
   0xa   : > { %s63_s17 = sadd.s32 (!%p334_p2), %s419_s8, %s336_s15  ;;  %s58_s22 = scalar_lea.vmem (!%p334_p2), [#allocation0], %s335_s16 }
   0xb   : > { %s337_s18 = sshll.u32 (!%p334_p2), %s63_s17, 3 }
   0xc   : > { %s65_s21 = scalar_lea.vmem (!%p334_p2), %s520_s0, %s337_s18 }
   0xd   : > { %v93_v0 = vld [vmem:[%s65_s21] sm:$0xff] (!%p334_p2) }
   0xe   : > { %94 = vst [vmem:[%s58_s22] sm:$0xff] %v93_v0 }
   0xf PF: > { %p338_p3 = scmp.ge.s32.totalorder %s427_s10, 1  ;;  %p99_p4 = scmp.lt.s32.totalorder %s427_s10, 9 }
  0x11   : > { %p100_p5 = pnand %p338_p3, %p99_p4 }
  0x13   : > { %103 = sbr.rel (%p100_p5) target bundleno = 1216 (0x4c0), region = 54 }
  0x1a   : > { %s106_s23 = sand.u32 1, %s332_s11   ;;  %v117_v1 = vlaneseq  ;;  %v429_v10 = vmov -1.0   ;;  %s342_s26 = sshll.u32 %s415_s7, 2 }
  0x1b   : > { %s339_s24 = sshll.u32 %s106_s23, 3  ;;  %s228_s27 = sadd.s32 %s411_s6, %s342_s26 }
  0x1c   : > { %v482_v2 = vand.u32 127, %v117_v1  ;;  %v121_v3 = vshrl.u32 %v117_v1, 7  ;;  %s108_s25 = scalar_lea.vmem [#allocation0], %s339_s24  ;;  %s343_s28 = sshll.u32 %s228_s27, 3 }
  0x1d   : > { %v124_v4 = vld [vmem:[%s108_s25] sm:$0xff]  ;;  %s230_s2 = scalar_lea.vmem %s521_s1, %s343_s28 }
  0x1e   : > { %vm119_vm0 = vcmp.lt.s32.totalorder %v482_v2, 8  ;;  %vm123_vm1 = vcmp.eq.s32.totalorder %v121_v3, %v482_v2  ;;  %vm128_vm2 = vcmp.ge.s32.totalorder %v121_v3, %v482_v2  ;;  %vm142_vm4 = vcmp.eq.s32.totalorder %v482_v2, 0 }
  0x1f   : > { %v125_v5 = vsel %vm123_vm1, %v124_v4, 0.0  ;;  %vm129_vm3 = vmand %vm128_vm2, %vm119_vm0  ;;  %vm139_vm5 = vcmp.eq.s32.totalorder %v482_v2, %v121_v3  ;;  %v143_v11 = vsel %vm142_vm4, 1.0, %v429_v10  ;;  %vm150_vm6 = vcmp.eq.s32.totalorder %v482_v2, 1 }
  0x20   : > { %v130_v6 = vsel %vm129_vm3, %v124_v4, 0.0  ;;  %126 = vadd.xlane.f32.xlu0 %v125_v5  ;;  %v144_v12 = vsel %vm139_vm5, %v143_v11, 0.0  ;;  %vm160_vm7 = vcmp.eq.s32.totalorder %v482_v2, 2  ;;  %vm170_vm8 = vcmp.eq.s32.totalorder %v482_v2, 3 }
  0x21   : > { %vm180_vm9 = vcmp.eq.s32.totalorder %v482_v2, 4  ;;  %vm190_vm10 = vcmp.eq.s32.totalorder %v482_v2, 5  ;;  %vm200_vm11 = vcmp.eq.s32.totalorder %v482_v2, 6  ;;  %vm210_vm12 = vcmp.eq.s32.totalorder %v482_v2, 7 }
  0xad   : > { %v487_v7 = vpop.xlane.xlu0 %126 }
  0xae   : > { %387 = vrcp.f32 %v487_v7  ;;  %vm217_vm13 = vweird.f32 %v487_v7 }
  0xb8   : > { %v388_v8 = vpop.eup %387 }
  0xb9   : > { %v132_v9 = vmul.f32 %v388_v8, %v130_v6 }
  0xbb   : > { %133 = vst [vmem:[#allocation2] sm:$0xff] %v132_v9 }
  0xc2   : > { %v146_v13 = vld [vmem:[#allocation2 + $0x1] ss:$0 sm:$0xff]  ;;  %v156_v16 = vld [vmem:[#allocation2 + $0x2] ss:$0 sm:$0xff]  ;;  %v166_v21 = vld [vmem:[#allocation2 + $0x3] ss:$0 sm:$0xff] }
  0xc3   : > { %v147_v14 = vxor.u32 2147483648, %v146_v13  ;;  %v157_v18 = vxor.u32 2147483648, %v156_v16  ;;  %v167_v23 = vxor.u32 2147483648, %v166_v21  ;;  %v176_v26 = vld [vmem:[#allocation2 + $0x4] ss:$0 sm:$0xff] }
  0xc4   : > { %v177_v28 = vxor.u32 2147483648, %v176_v26  ;;  %v186_v31 = vld [vmem:[#allocation2 + $0x5] ss:$0 sm:$0xff]  ;;  %v196_v36 = vld [vmem:[#allocation2 + $0x6] ss:$0 sm:$0xff] }
  0xc5   : > { %v151_v15 = vmul.f32 %v147_v14, %v144_v12  ;;  %v187_v33 = vxor.u32 2147483648, %v186_v31  ;;  %v197_v38 = vxor.u32 2147483648, %v196_v36  ;;  %v206_v41 = vld [vmem:[#allocation2 + $0x7] ss:$0 sm:$0xff] }
  0xc6   : > { %v207_v43 = vxor.u32 2147483648, %v206_v41 }
  0xc7   : > { %152 = vadd.xlane.f32.xlu0 %v151_v15 }
 0x154   : > { %v153_v17 = vpop.xlane.xlu0 %152 }
 0x155   : > { %v154_v19 = vsel %vm150_vm6, %v153_v17, %v144_v12 }
 0x156   : > { %v161_v20 = vmul.f32 %v157_v18, %v154_v19 }
 0x158   : > { %162 = vadd.xlane.f32.xlu1 %v161_v20 }
 0x1e5   : > { %v163_v22 = vpop.xlane.xlu1 %162 }
 0x1e6   : > { %v164_v24 = vsel %vm160_vm7, %v163_v22, %v154_v19 }
 0x1e7   : > { %v171_v25 = vmul.f32 %v167_v23, %v164_v24 }
 0x1e9   : > { %172 = vadd.xlane.f32.xlu1 %v171_v25 }
 0x276   : > { %v173_v27 = vpop.xlane.xlu1 %172 }
 0x277   : > { %v174_v29 = vsel %vm170_vm8, %v173_v27, %v164_v24 }
 0x278   : > { %v181_v30 = vmul.f32 %v177_v28, %v174_v29 }
 0x27a   : > { %182 = vadd.xlane.f32.xlu0 %v181_v30 }
 0x307   : > { %v183_v32 = vpop.xlane.xlu0 %182 }
 0x308   : > { %v184_v34 = vsel %vm180_vm9, %v183_v32, %v174_v29 }
 0x309   : > { %v191_v35 = vmul.f32 %v187_v33, %v184_v34 }
 0x30b   : > { %192 = vadd.xlane.f32.xlu1 %v191_v35 }
 0x398   : > { %v193_v37 = vpop.xlane.xlu1 %192 }
 0x399   : > { %v194_v39 = vsel %vm190_vm10, %v193_v37, %v184_v34 }
 0x39a   : > { %v201_v40 = vmul.f32 %v197_v38, %v194_v39 }
 0x39c   : > { %202 = vadd.xlane.f32.xlu0 %v201_v40 }
 0x429   : > { %v203_v42 = vpop.xlane.xlu0 %202 }
 0x42a   : > { %v204_v44 = vsel %vm200_vm11, %v203_v42, %v194_v39 }
 0x42b   : > { %v211_v45 = vmul.f32 %v207_v43, %v204_v44 }
 0x42d   : > { %212 = vadd.xlane.f32.xlu1 %v211_v45 }
 0x4ba   : > { %v213_v46 = vpop.xlane.xlu1 %212 }
 0x4bb   : > { %v214_v47 = vsel %vm210_vm12, %v213_v46, %v204_v44 }
 0x4bc   : > { %v216_v48 = vmul.f32 %v388_v8, %v214_v47 }
 0x4be   : > { %v218_v49 = vsel %vm217_vm13, %v214_v47, %v216_v48 }
 0x4bf   : > { %259 = vst [vmem:[%s230_s2] sm:$0xff] %v218_v49 }
 0x4c0 PF: > { %s7_s10 = sadd.s32 1, %s427_s10   ;;  %s522_s6 = smov %s419_s8 }
 0x4c1   : > { %p4_p6 = scmp.ge.s32.totalorder %s7_s10, 10   ;;  %s523_s7 = smov %s423_s9 }
 0x4c2   : > { %s524_s8 = smov %s527_s12  ;;  %s525_s9 = smov %s531_s13 }
 0x4c3   :  { %6 = sbr.rel (!%p4_p6) target bundleno = 3 (0x3), region = 125 }

// kernel: vgpmms_forward.1
= control target key start
LH: loop header
LB: loop body
LE: loop exit
PB: predicated region body
PF: predicated region fallthrough
CT: control target
= control target key end

     0   :  { %s2445_s25 = smov 0   ;;  %s2447_s26 = smov 0   ;;  %s2827_s0 = inlined_call_operand.vmem [shape: f32[4,6,1024], index: 0, kind: input, shape index: {}]   ;;  %s2828_s1 = inlined_call_operand.vmem [shape: bf16[6,6], index: 1, kind: input, shape index: {}]   ;;  %s2829_s2 = inlined_call_operand.vmem [shape: f32[6,1], index: 2, kind: input, shape index: {}]   ;;  %s2830_s3 = inlined_call_operand.vmem [shape: bf16[6,6], index: 3, kind: input, shape index: {}]   ;;  %s2831_s4 = inlined_call_operand.vmem [shape: f32[6,1], index: 4, kind: input, shape index: {}]   ;;  %s2832_s5 = inlined_call_operand.vmem [shape: bf16[16,8], index: 5, kind: input, shape index: {}]   ;;  %s2833_s6 = inlined_call_operand.vmem [shape: f32[16,1], index: 6, kind: input, shape index: {}]   ;;  %s2834_s7 = inlined_call_operand.vmem [shape: bf16[4,16], index: 7, kind: input, shape index: {}]   ;;  %s2835_s8 = inlined_call_operand.vmem [shape: f32[4,1], index: 8, kind: input, shape index: {}]   ;;  %s2836_s9 = inlined_call_operand.vmem [shape: f32[4,8,1024], index: 9, kind: output, shape index: {0}]   ;;  %s2837_s10 = inlined_call_operand.vmem [shape: f32[4,4,1], index: 10, kind: output, shape index: {1}]   ;;  %s2838_s11 = inlined_call_operand.vmem [shape: f32[4,4,8], index: 11, kind: output, shape index: {2}]   ;;  %s2839_s12 = inlined_call_operand.vmem [shape: f32[4,4,8,8], index: 12, kind: output, shape index: {3}]   ;;  %s2840_s13 = inlined_call_operand.vmem [shape: f32[4,1,1], index: 13, kind: output, shape index: {4}]  }
   0x1   :  { %2844 = sst [smem:[#allocation11_spill]] %s2832_s5  ;;  %s2449_s27 = smov 0  }
   0x2   :  { %2845 = sst [smem:[#allocation12_spill]] %s2834_s7  ;;  %s2451_s28 = smov 0  }
   0x3   :  { %2846 = sst [smem:[#allocation13_spill]] %s2837_s10  ;;  %s2453_s29 = smov 0  }
   0x4 LB: > { %2847 = sst [smem:[#allocation6_spill]] %s2361_s27  ;;  %s33_s30 = sadd.s32 1, %s2361_s27  ;;  %s2369_s29 = sphi %s2453_s29, %s24_s29   ;;  %s2365_s28 = sphi %s2451_s28, %s2861_s28   ;;  %s2361_s27 = sphi %s2449_s27, %s2860_s27   ;;  %s2357_s26 = sphi %s2447_s26, %s2859_s26   ;;  %s2353_s25 = sphi %s2445_s25, %s2858_s25  }
   0x5   : > { %2848 = sst [smem:[#allocation7_spill]] %s2365_s28  ;;  %s36_s14 = sadd.s32 1, %s2365_s28 }
   0x6   : > { %2849 = sst [smem:[#allocation8_spill]] %s2369_s29  ;;  %p34_p0 = scmp.ge.s32.totalorder %s33_s30, 2 }
   0x7   : > { %p2191_p1 = scmp.ge.s32.totalorder %s2369_s29, 1  ;;  %p417_p2 = scmp.lt.s32.totalorder %s2369_s29, 9 }
   0x8   : > { %s2863_s30 = smov (%p34_p0, %s33_s30), 0  ;;  %s2865_s14 = smov (!%p34_p0, %s36_s14), %s2365_s28 }
   0x9   : > { %2850 = sst [smem:[#allocation9_spill]] %s2863_s30  ;;  %p418_p3 = pnand %p2191_p1, %p417_p2 }
   0xa   : > { %p38_p4 = scmp.ge.s32.totalorder %s2865_s14, 4  ;;  %s2192_s15 = sshll.u32 (!%p418_p3), %s2353_s25, 2 }
   0xb   : > { %421 = sbr.rel (%p418_p3) target bundleno = 1477 (0x5c5), region = 56  ;;  %p486_p5 = scmp.lt.s32.totalorder (!%p418_p3), %s2357_s26, 3 }
   0xc   : > { %s2867_s14 = smov (%p38_p4, %s2865_s14), 0  ;;  %p488_p6 = scmp.lt.s32.totalorder (!%p418_p3), %s2192_s15, 7 }
   0xd   : > { %2851 = sst [smem:[#allocation10_spill]] %s2867_s14  ;;  %s2852_s10 = sld [smem:[#allocation13_spill]] (!%p418_p3) }
   0xe   : > { %p2202_p7 = scmp.ne.s32.totalorder (!%p418_p3), %s2353_s25, 0 }
  0x12   : > { %s2869_s26 = smov (!%p486_p5, %s2357_s26), 3  ;;  %s2871_s15 = smov (!%p488_p6, %s2192_s15), 7 }
  0x13   : > { %s2193_s16 = sshll.u32 %s2869_s26, 3  ;;  %s2198_s17 = sshll.u32 %s2869_s26, 2  ;;  %vm526_vm0 = vcmask (!%p2202_p7), 3072   ;;  %vm528_vm1 = vcmask (!%p2202_p7), 60416   ;;  %vm530_vm2 = vcmask (!%p2202_p7), 64512   ;;  %v2371_v0 = vmov (!%p2202_p7), 0.0  }
  0x14   : > { %s491_s18 = sadd.s32 %s2193_s16, %s2871_s15  ;;  %s2485_s21 = scalar_lea.vmem %s2852_s10, %s2198_s17  ;;  %527 = vst.msk [vmem:[#allocation2] sm:$0xf] (!%p2202_p7), %vm526_vm0, %v2371_v0  ;;  %vm535_vm3 = vcmask (!%p2202_p7), 0  }
  0x15   : > { %s2194_s22 = sshll.u32 %s491_s18, 3  ;;  %s2490_s14 = scalar_lea.vmem %s2838_s11, %s2198_s17  ;;  %529 = vst.msk [vmem:[#allocation3] sm:$0xf] (!%p2202_p7), %vm528_vm1, %v2371_v0 }
  0x16   : > { %s493_s27 = scalar_lea.vmem %s2827_s0, %s2194_s22  ;;  %s2498_s5 = scalar_lea.vmem %s2836_s9, %s2194_s22  ;;  %531 = vst.msk [vmem:[#allocation4] sm:$0xff] (!%p2202_p7), %vm530_vm2, %v2371_v0  ;;  %532 = vst.msk [vmem:[#allocation4 + $0x8] sm:$0xff] (!%p2202_p7), %vm530_vm2, %v2371_v0 }
  0x17   : > { %s2223_s15 = sshll.u32 %s2869_s26, 5  ;;  %s520_s20 = scalar_lea.vmem %s2840_s13, %s2869_s26  ;;  %533 = vst.msk [vmem:[#allocation4 + $0x10] sm:$0xff] (!%p2202_p7), %vm530_vm2, %v2371_v0  ;;  %534 = vst.msk [vmem:[#allocation4 + $0x18] sm:$0xff] (!%p2202_p7), %vm530_vm2, %v2371_v0 }
  0x18   : > { %s2508_s23 = scalar_lea.vmem %s2839_s12, %s2223_s15  ;;  %525 = sbr.rel (%p2202_p7) target bundleno = 31 (0x1f), region = 60  ;;  %536 = vst.msk [vmem:[#allocation5] sm:$0x1] (!%p2202_p7), %vm535_vm3, %v2371_v0 }
  0x1f PF: > { %v2511_v1 = vld [vmem:[%s493_s27 + $0x8] sm:$0x3f]  ;;  %vm556_vm4 = vcmask 1042432   ;;  %v2513_v2 = vld [vmem:[%s493_s27 + $0x18] sm:$0x3f]  ;;  %v2372_v11 = vmov 0  }
  0x20   : > { %v542_v3 = vpack.c.bf16 %v2511_v1, %v2511_v1  ;;  %v544_v4 = vpack.c.bf16 %v2513_v2, %v2513_v2  ;;  %v2519_v5 = vld [vmem:[%s493_s27] sm:$0x3f]  ;;  %v2521_v6 = vld [vmem:[%s493_s27 + $0x10] sm:$0x3f]  ;;  %601 = vmatprep.mubr.bf16.mxu0 %v2372_v11  ;;  %642 = vmatprep.mubr.bf16.mxu1 %v2372_v11  ;;  %vm552_vm5 = vcmask 48128   ;;  %v793_v16 = vmul.f32 %v2511_v1, %v2511_v1  ;;  %s2855_s28 = sld [smem:[#allocation11_spill]] }
  0x21   : > { %v541_v7 = vpack.c.bf16 %v2519_v5, %v2519_v5  ;;  %v543_v8 = vpack.c.bf16 %v2521_v6, %v2521_v6  ;;  %v546_v9 = vld [vmem:[%s2829_s2] sm:$0x3f]  ;;  %2268 = vset.pattern.permute.xlu0 %v2372_v11  ;;  %2269 = vset.pattern.permute.xlu1 %v2372_v11  ;;  %v795_v17 = vmul.f32 %v2513_v2, %v2513_v2  ;;  %vm763_vm6 = vcmask 1045504   ;;  %s2856_s30 = sld [smem:[#allocation12_spill]]  ;;  %p2220_p8 = scmp.ne.s32.totalorder %s2353_s25, 1 }
  0x22   : > { %2203 = vmatprep.subr.msk.bf16.mxu0 %vm556_vm4, %v542_v3  ;;  %2205 = vmatprep.subr.msk.bf16.mxu1 %vm556_vm4, %v544_v4  ;;  %v545_v13 = vld [vmem:[%s2828_s1] sm:$0x7]  ;;  %v792_v18 = vmul.f32 %v2519_v5, %v2519_v5  ;;  %v803_v19 = vsel %vm763_vm6, %v793_v16, 0.0  ;;  %v794_v21 = vmul.f32 %v2521_v6, %v2521_v6  ;;  %vm1047_vm0 = vcmask 1043456  }
  0x23   : > { %v558_v10 = vsel %vm556_vm4, %v541_v7, 0  ;;  %v564_v12 = vsel %vm556_vm4, %v543_v8, 0  ;;  %549 = vperm.xlu0 %2268, %v546_v9   ;;  %v656_v14 = vld [vmem:[%s2831_s4] sm:$0x3f]  ;;  %v817_v20 = vsel %vm763_vm6, %v795_v17, 0.0  ;;  %v804_v22 = vrot.slane %v803_v19, 4 }
  0x24   : > { %570 = vmatpush1.bf16.msra.mxu0 %v558_v10  ;;  %611 = vmatpush1.bf16.msra.mxu1 %v564_v12  ;;  %v1159_v15 = vld [vmem:[%s2835_s8] sm:$0xf]  ;;  %v818_v23 = vrot.slane %v817_v20, 4  ;;  %v796_v24 = vsel %vm763_vm6, %v792_v18, 0.0  ;;  %v810_v25 = vsel %vm763_vm6, %v794_v21, 0.0  ;;  %vm1043_vm1 = vcmask 64512  }
  0x25   : > { %v797_v26 = vrot.slane %v796_v24, 4  ;;  %v805_v27 = vadd.f32 %v804_v22, %v803_v19  ;;  %v811_v29 = vrot.slane %v810_v25, 4  ;;  %vm1807_vm2 = vcmask 0  }
  0x26   : > { %v819_v28 = vadd.f32 %v818_v23, %v817_v20  ;;  %vm1165_vm3 = vcmask 130048  }
  0x27   : > { %2204 = vmatmul.mubr.msk.bf16.vlgmr.msra.gmra.mrb[0].mxu0 %vm552_vm5, %v545_v13  ;;  %2206 = vmatmul.mubr.msk.bf16.vlgmr.msra.gmra.mrb[0].mxu1 %vm552_vm5, %v545_v13  ;;  %v798_v30 = vadd.f32 %v797_v26, %v796_v24  ;;  %v806_v31 = vrot.slane %v805_v27, 2  ;;  %v812_v33 = vadd.f32 %v811_v29, %v810_v25 }
  0x28   : > { %709 = vmatprep.mubr.bf16.mxu0 %v2372_v11  ;;  %659 = vperm.xlu0 %2268, %v656_v14   ;;  %v820_v32 = vrot.slane %v819_v28, 2 }
  0x29   : > { %750 = vmatprep.mubr.bf16.mxu1 %v2372_v11  ;;  %v799_v34 = vrot.slane %v798_v30, 2  ;;  %v807_v35 = vadd.f32 %v806_v31, %v805_v27  ;;  %v813_v37 = vrot.slane %v812_v33, 2 }
  0x2a   : > { %v821_v36 = vadd.f32 %v820_v32, %v819_v28 }
  0x2b   : > { %v800_v38 = vadd.f32 %v799_v34, %v798_v30  ;;  %v808_v39 = vrot.slane %v807_v35, 1  ;;  %v814_v41 = vadd.f32 %v813_v37, %v812_v33 }
  0x2c   : > { %1162 = vperm.xlu0 %2268, %v1159_v15   ;;  %v822_v40 = vrot.slane %v821_v36, 1 }
  0x2d   : > { %v801_v44 = vrot.slane %v800_v38, 1  ;;  %v809_v48 = vadd.f32 %v808_v39, %v807_v35  ;;  %v815_v54 = vrot.slane %v814_v41, 1 }
  0x2e   : > { %v2565_v49 = vadd.f32 %v822_v40, %v821_v36 }
  0x2f   : > { %v802_v14 = vadd.f32 %v801_v44, %v800_v38  ;;  %v857_v26 = vmax.f32 %v809_v48, 1e-16  ;;  %v816_v27 = vadd.f32 %v815_v54, %v814_v41 }
  0x30   : > { %v859_v38 = vmax.f32 %v2565_v49, 1e-16 }
  0x31   : > { %v856_v34 = vmax.f32 %v802_v14, 1e-16  ;;  %2271 = vrsqrt.f32 %v857_v26  ;;  %v858_v41 = vmax.f32 %v816_v27, 1e-16 }
  0x33   : > { %2273 = vrsqrt.f32 %v856_v34 }
  0x34   : > { %2275 = vrsqrt.f32 %v859_v38 }
  0x35   : > { %2277 = vrsqrt.f32 %v858_v41 }
  0xa2   : > { %v550_v42 = vpop.permute.xlu0 %549 }
  0xfa   : > { %v603_v43 = vpop.f32.mrb[0].mxu0  ;;  %v644_v46 = vpop.f32.mrb[0].mxu1 }
  0xfb   : > { %v2563_v45 = vadd.f32 %v603_v43, %v550_v42  ;;  %v605_v47 = vpop.f32.mrb[1].mxu0  ;;  %v2567_v50 = vadd.f32 %v644_v46, %v550_v42  ;;  %v646_v52 = vpop.f32.mrb[1].mxu1 }
  0xfc   : > { %v2569_v51 = vadd.f32 %v605_v47, %v550_v42  ;;  %v607_v53 = vpop.f32.mrb[2].mxu0  ;;  %v2577_v57 = vadd.f32 %v646_v52, %v550_v42  ;;  %v648_v58 = vpop.f32.mrb[2].mxu1 }
  0xfd   : > { %v759_v55 = vmul.f32 %v2563_v45, %v2519_v5  ;;  %v824_v56 = vmul.f32 %v2563_v45, %v2563_v45  ;;  %944 = vst [vmem:[%s2498_s5] sm:$0x3f] %v2563_v45  ;;  %v608_v59 = vpop.f32.mrb[3].mxu0  ;;  %v761_v60 = vmul.f32 %v2567_v50, %v2521_v6  ;;  %v826_v61 = vmul.f32 %v2567_v50, %v2567_v50  ;;  %v649_v0 = vpop.f32.mrb[3].mxu1 }
  0xfe   : > { %946 = vst [vmem:[%s2498_s5 + $0x10] sm:$0x3f] %v2567_v50  ;;  %v760_v62 = vmul.f32 %v2569_v51, %v2511_v1  ;;  %v825_v63 = vmul.f32 %v2569_v51, %v2569_v51  ;;  %945 = vst [vmem:[%s2498_s5 + $0x8] sm:$0x3f] %v2569_v51  ;;  %v762_v7 = vmul.f32 %v2577_v57, %v2513_v2 }
  0xff   : > { %v764_v3 = vsel %vm763_vm6, %v759_v55, 0.0  ;;  %v828_v4 = vsel %vm763_vm6, %v824_v56, 0.0  ;;  %v827_v8 = vmul.f32 %v2577_v57, %v2577_v57  ;;  %947 = vst [vmem:[%s2498_s5 + $0x18] sm:$0x3f] %v2577_v57  ;;  %v778_v12 = vsel %vm763_vm6, %v761_v60, 0.0 }
 0x100   : > { %v765_v9 = vrot.slane %v764_v3, 4  ;;  %v829_v10 = vrot.slane %v828_v4, 4  ;;  %v842_v13 = vsel %vm763_vm6, %v826_v61, 0.0  ;;  %v771_v16 = vsel %vm763_vm6, %v760_v62, 0.0 }
 0x101   : > { %v843_v15 = vrot.slane %v842_v13, 4  ;;  %v835_v17 = vsel %vm763_vm6, %v825_v63, 0.0  ;;  %v779_v19 = vrot.slane %v778_v12, 4  ;;  %v772_v20 = vrot.slane %v771_v16, 4 }
 0x102   : > { %v830_v18 = vadd.f32 %v829_v10, %v828_v4  ;;  %v836_v21 = vrot.slane %v835_v17, 4  ;;  %v766_v22 = vadd.f32 %v765_v9, %v764_v3  ;;  %v785_v24 = vsel %vm763_vm6, %v762_v7, 0.0 }
 0x103   : > { %v844_v23 = vadd.f32 %v843_v15, %v842_v13  ;;  %v849_v25 = vsel %vm763_vm6, %v827_v8, 0.0  ;;  %v773_v31 = vadd.f32 %v772_v20, %v771_v16  ;;  %v786_v32 = vrot.slane %v785_v24, 4  ;;  %v651_v15 = vld [vmem:[%s2830_s3] sm:$0x7] }
 0x104   : > { %v831_v28 = vrot.slane %v830_v18, 2  ;;  %v837_v29 = vadd.f32 %v836_v21, %v835_v17  ;;  %v850_v33 = vrot.slane %v849_v25, 4  ;;  %v780_v36 = vadd.f32 %v779_v19, %v778_v12  ;;  %v2272_v17 = vpop.eup %2271 }
 0x105   : > { %v845_v30 = vrot.slane %v844_v23, 2  ;;  %v767_v39 = vrot.slane %v766_v22, 2  ;;  %v787_v46 = vadd.f32 %v786_v32, %v785_v24  ;;  %v774_v48 = vrot.slane %v773_v31, 2  ;;  %v2274_v20 = vpop.eup %2273 }
 0x106   : > { %v832_v35 = vadd.f32 %v831_v28, %v830_v18  ;;  %v838_v37 = vrot.slane %v837_v29, 2  ;;  %v851_v42 = vadd.f32 %v850_v33, %v849_v25  ;;  %v781_v54 = vrot.slane %v780_v36, 2  ;;  %v2276_v24 = vpop.eup %2275 }
 0x107   : > { %v846_v40 = vadd.f32 %v845_v30, %v844_v23  ;;  %v768_v56 = vadd.f32 %v767_v39, %v766_v22  ;;  %v788_v61 = vrot.slane %v787_v46, 2  ;;  %v652_v62 = vpack.c.bf16 %v2563_v45, %v2563_v45  ;;  %v2278_v27 = vpop.eup %2277 }
 0x108   : > { %v833_v43 = vrot.slane %v832_v35, 1  ;;  %v839_v44 = vadd.f32 %v838_v37, %v837_v29  ;;  %v852_v52 = vrot.slane %v851_v42, 2  ;;  %v775_v0 = vadd.f32 %v774_v48, %v773_v31 }
 0x109   : > { %v847_v47 = vrot.slane %v846_v40, 1  ;;  %v782_v4 = vadd.f32 %v781_v54, %v780_v36  ;;  %v653_v8 = vpack.c.bf16 %v2569_v51, %v2569_v51  ;;  %v769_v9 = vrot.slane %v768_v56, 1 }
 0x10a   : > { %v834_v53 = vadd.f32 %v833_v43, %v832_v35  ;;  %v840_v55 = vrot.slane %v839_v44, 1  ;;  %v853_v59 = vadd.f32 %v852_v52, %v851_v42  ;;  %v655_v12 = vpack.c.bf16 %v2577_v57, %v2577_v57 }
 0x10b   : > { %v848_v58 = vadd.f32 %v847_v47, %v846_v40  ;;  %v789_v13 = vadd.f32 %v788_v61, %v787_v46  ;;  %2207 = vmatprep.subr.msk.bf16.mxu0 %vm556_vm4, %v653_v8  ;;  %v666_v45 = vsel %vm556_vm4, %v652_v62, 0  ;;  %v654_v14 = vpack.c.bf16 %v2567_v50, %v2567_v50 }
 0x10c   : > { %v868_v49 = vmax.f32 %v834_v53, 1e-16  ;;  %v841_v60 = vadd.f32 %v840_v55, %v839_v44  ;;  %v854_v3 = vrot.slane %v853_v59, 1  ;;  %v776_v51 = vrot.slane %v775_v0, 1  ;;  %2209 = vmatprep.subr.msk.bf16.mxu1 %vm556_vm4, %v655_v12  ;;  %678 = vmatpush1.bf16.msra.mxu0 %v666_v45  ;;  %v1026_v55 = vld [vmem:[%s2833_s6] sm:$0xff] }
 0x10d   : > { %v870_v63 = vmax.f32 %v848_v58, 1e-16  ;;  %v783_v57 = vrot.slane %v782_v4, 1  ;;  %v672_v18 = vsel %vm556_vm4, %v654_v14, 0  ;;  %v770_v19 = vadd.f32 %v769_v9, %v768_v56  ;;  %1030 = vperm.xlu1 %2269, %v1026_v55   ;;  %v1027_v56 = vld [vmem:[%s2833_s6 + $0x8] sm:$0xff]  ;;  %v660_v58 = vpop.permute.xlu0 %659 }
 0x10e   : > { %2279 = vrsqrt.f32 %v868_v49  ;;  %v869_v7 = vmax.f32 %v841_v60, 1e-16  ;;  %v855_v10 = vadd.f32 %v854_v3, %v853_v59  ;;  %719 = vmatpush1.bf16.msra.mxu1 %v672_v18  ;;  %v2373_v21 = vmov 1966171168  }
 0x10f   : > { %2281 = vrsqrt.f32 %v870_v63  ;;  %v955_v22 = vunpack.c.l.s4 %v2373_v21  ;;  %v957_v50 = vlaneseq  ;;  %v790_v23 = vrot.slane %v789_v13, 1  ;;  %2208 = vmatmul.mubr.msk.bf16.vlgmr.msra.gmra.mrb[4].mxu0 %vm552_vm5, %v651_v15 }
 0x110   : > { %2283 = vrsqrt.f32 %v869_v7  ;;  %v871_v16 = vmax.f32 %v855_v10, 1e-16  ;;  %v777_v25 = vadd.f32 %v776_v51, %v775_v0  ;;  %1092 = vmatprep.mubr.bf16.mxu0 %v2372_v11  ;;  %v784_v26 = vadd.f32 %v783_v57, %v782_v4 }
 0x111   : > { %2210 = vmatmul.mubr.msk.bf16.vlgmr.msra.gmra.mrb[4].mxu1 %vm552_vm5, %v651_v15  ;;  %v864_v28 = vmul.f32 %v2274_v20, %v770_v19  ;;  %v956_v30 = vunpack.c.0.s8 %v955_v22  ;;  %v2625_v31 = vshrl.u32 %v957_v50, 7  ;;  %v791_v32 = vadd.f32 %v790_v23, %v789_v13  ;;  %1035 = vperm.xlu1 %2269, %v1027_v56  }
 0x112   : > { %2285 = vrsqrt.f32 %v871_v16  ;;  %1135 = vmatprep.mubr.bf16.mxu1 %v2372_v11  ;;  %v865_v35 = vmul.f32 %v2272_v17, %v777_v25  ;;  %v866_v37 = vmul.f32 %v2278_v27, %v784_v26  ;;  %vm2632_vm7 = vcmp.lt.s32.totalorder %v957_v50, 512 }
 0x113   : > { %v2628_v40 = vsub.s32 %v956_v30, %v2625_v31  ;;  %v867_v42 = vmul.f32 %v2276_v24, %v791_v32  ;;  %vm1782_vm4 = vcmask 3072   ;;  %vm1786_vm5 = vcmask 60416  }
 0x118   : > { %v2280_v29 = vpop.eup %2279 }
 0x119   : > { %v2282_v33 = vpop.eup %2281  ;;  %v876_v34 = vmul.f32 %v2280_v29, %v864_v28 }
 0x11a   : > { %v2284_v36 = vpop.eup %2283  ;;  %v878_v39 = vmul.f32 %v2282_v33, %v866_v37 }
 0x11b   : > { %v877_v38 = vmul.f32 %v2284_v36, %v865_v35 }
 0x11c   : > { %v2286_v43 = vpop.eup %2285 }
 0x11d   : > { %v952_v44 = vcombine.low %v876_v34, %v877_v38  ;;  %v879_v46 = vmul.f32 %v2286_v43, %v867_v42 }
 0x11f   : > { %v960_v41 = vrot.slane %v952_v44, %v2628_v40  ;;  %v953_v47 = vcombine.low %v878_v39, %v879_v46 }
 0x121   : > { %v967_v48 = vrot.slane %v953_v47, %v2628_v40 }
 0x123   : > { %v968_v52 = vcombine.low %v960_v41, %v967_v48 }
 0x125   : > { %v975_v54 = vrot.slane %v968_v52, %v2628_v40 }
 0x127   : > { %2211 = vst.msk [vmem:[%s2498_s5 + $0x6] ss:$8 sm:$0xf] %vm2632_vm7, %v975_v54 }
 0x1e2   : > { %v711_v59 = vpop.f32.mrb[4].mxu0 }
 0x1e3   : > { %v712_v49 = vadd.f32 %v711_v59, %v660_v58  ;;  %v713_v60 = vpop.f32.mrb[5].mxu0 }
 0x1e4   : > { %v752_v61 = vpop.f32.mrb[4].mxu1  ;;  %v714_v62 = vadd.f32 %v713_v60, %v660_v58  ;;  %v715_v63 = vpop.f32.mrb[6].mxu0 }
 0x1e5   : > { %v880_v0 = vsub.f32 %v2519_v5, %v712_v49  ;;  %v753_v3 = vadd.f32 %v752_v61, %v660_v58  ;;  %v754_v4 = vpop.f32.mrb[5].mxu1  ;;  %v716_v7 = vpop.f32.mrb[7].mxu0 }
 0x1e6   : > { %v881_v8 = vsub.f32 %v2511_v1, %v714_v62  ;;  %v755_v9 = vadd.f32 %v754_v4, %v660_v58  ;;  %v756_v10 = vpop.f32.mrb[6].mxu1 }
 0x1e7   : > { %v884_v12 = vmul.f32 %v880_v0, %v880_v0  ;;  %v882_v13 = vsub.f32 %v2521_v6, %v753_v3  ;;  %v757_v45 = vpop.f32.mrb[7].mxu1 }
 0x1e8   : > { %v885_v14 = vmul.f32 %v881_v8, %v881_v8  ;;  %v883_v15 = vsub.f32 %v2513_v2, %v755_v9 }
 0x1e9   : > { %v888_v51 = vsel %vm763_vm6, %v884_v12, 0.0  ;;  %v886_v16 = vmul.f32 %v882_v13, %v882_v13 }
 0x1ea   : > { %v889_v17 = vrot.slane %v888_v51, 4  ;;  %v895_v5 = vsel %vm763_vm6, %v885_v14, 0.0  ;;  %v887_v57 = vmul.f32 %v883_v15, %v883_v15 }
 0x1eb   : > { %v902_v18 = vsel %vm763_vm6, %v886_v16, 0.0  ;;  %v896_v19 = vrot.slane %v895_v5, 4 }
 0x1ec   : > { %v890_v1 = vadd.f32 %v889_v17, %v888_v51  ;;  %v903_v20 = vrot.slane %v902_v18, 4  ;;  %v909_v21 = vsel %vm763_vm6, %v887_v57, 0.0 }
 0x1ed   : > { %v897_v22 = vadd.f32 %v896_v19, %v895_v5  ;;  %v910_v6 = vrot.slane %v909_v21, 4 }
 0x1ee   : > { %v891_v50 = vrot.slane %v890_v1, 2  ;;  %v904_v23 = vadd.f32 %v903_v20, %v902_v18 }
 0x1ef   : > { %v898_v24 = vrot.slane %v897_v22, 2  ;;  %v911_v2 = vadd.f32 %v910_v6, %v909_v21  ;;  %v2691_v21 = vpop.permute.xlu0 %1162 }
 0x1f0   : > { %v892_v25 = vadd.f32 %v891_v50, %v890_v1  ;;  %v905_v26 = vrot.slane %v904_v23, 2  ;;  %v2270_v1 = vld [vmem:[%s2855_s28] sm:$0xff]  }
 0x1f1   : > { %v899_v27 = vadd.f32 %v898_v24, %v897_v22  ;;  %v912_v28 = vrot.slane %v911_v2, 2  ;;  %v1800_v22 = vld [vmem:[#allocation5] sm:$0x1] }
 0x1f2   : > { %v893_v29 = vrot.slane %v892_v25, 1  ;;  %v906_v30 = vadd.f32 %v905_v26, %v904_v23  ;;  %v1031_v23 = vpop.permute.xlu1 %1030 }
 0x1f3   : > { %v900_v32 = vrot.slane %v899_v27, 1  ;;  %v913_v33 = vadd.f32 %v912_v28, %v911_v2 }
 0x1f4   : > { %v894_v34 = vadd.f32 %v893_v29, %v892_v25  ;;  %v907_v35 = vrot.slane %v906_v30, 1 }
 0x1f5   : > { %v901_v36 = vadd.f32 %v900_v32, %v899_v27  ;;  %v914_v37 = vrot.slane %v913_v33, 1 }
 0x1f6   : > { %2287 = vrsqrt.f32 %v894_v34  ;;  %v908_v38 = vadd.f32 %v907_v35, %v906_v30  ;;  %vm918_vm8 = vcmp.eq.f32.partialorder %v894_v34, inf  ;;  %vm920_vm9 = vcmp.eq.f32.partialorder %v894_v34, 0.0  ;;  %v1036_v24 = vpop.permute.xlu1 %1035 }
 0x1f7   : > { %2289 = vrsqrt.f32 %v901_v36  ;;  %v915_v39 = vadd.f32 %v914_v37, %v913_v33  ;;  %v1801_v42 = vadd.f32 %v901_v36, %v894_v34  ;;  %v921_v48 = vand.u32 2147483648, %v894_v34 }
 0x1f8   : > { %2291 = vrsqrt.f32 %v908_v38  ;;  %vm925_vm10 = vcmp.eq.f32.partialorder %v901_v36, inf  ;;  %vm927_vm11 = vcmp.eq.f32.partialorder %v901_v36, 0.0  ;;  %v928_v56 = vand.u32 2147483648, %v901_v36 }
 0x1f9   : > { %2293 = vrsqrt.f32 %v915_v39  ;;  %v1802_v43 = vadd.f32 %v1801_v42, %v908_v38  ;;  %vm932_vm12 = vcmp.eq.f32.partialorder %v908_v38, inf  ;;  %vm934_vm13 = vcmp.eq.f32.partialorder %v908_v38, 0.0 }
 0x1fa   : > { %v935_v61 = vand.u32 2147483648, %v908_v38  ;;  %vm939_vm14 = vcmp.eq.f32.partialorder %v915_v39, inf  ;;  %v942_v4 = vand.u32 2147483648, %v915_v39  ;;  %vm941_vm15 = vcmp.eq.f32.partialorder %v915_v39, 0.0 }
 0x1fb   : > { %v1803_v44 = vadd.f32 %v1802_v43, %v915_v39 }
 0x1fd   : > { %1804 = vadd.xlane.f32.xlu0 %v1803_v44 }
 0x200   : > { %v2288_v46 = vpop.eup %2287 }
 0x201   : > { %v2290_v41 = vpop.eup %2289  ;;  %v917_v47 = vmul.f32 %v2288_v46, %v894_v34 }
 0x202   : > { %v924_v52 = vmul.f32 %v2290_v41, %v901_v36  ;;  %v2292_v54 = vpop.eup %2291 }
 0x203   : > { %v919_v55 = vsel %vm918_vm8, %v894_v34, %v917_v47  ;;  %v2294_v58 = vpop.eup %2293  ;;  %v931_v49 = vmul.f32 %v2292_v54, %v908_v38 }
 0x204   : > { %v922_v59 = vsel %vm920_vm9, %v921_v48, %v919_v55  ;;  %v926_v60 = vsel %vm925_vm10, %v901_v36, %v924_v52  ;;  %v938_v63 = vmul.f32 %v2294_v58, %v915_v39 }
 0x205   : > { %v929_v62 = vsel %vm927_vm11, %v928_v56, %v926_v60  ;;  %v933_v0 = vsel %vm932_vm12, %v908_v38, %v931_v49 }
 0x206   : > { %v988_v3 = vcombine.low %v922_v59, %v929_v62  ;;  %v936_v7 = vsel %vm934_vm13, %v935_v61, %v933_v0  ;;  %v940_v8 = vsel %vm939_vm14, %v915_v39, %v938_v63  ;;  %v1154_v59 = vld [vmem:[%s2856_s30] sm:$0x3] }
 0x207   : > { %v943_v9 = vsel %vm941_vm15, %v942_v4, %v940_v8 }
 0x208   : > { %v996_v10 = vrot.slane %v988_v3, %v2628_v40  ;;  %v989_v12 = vcombine.low %v936_v7, %v943_v9 }
 0x20a   : > { %v1003_v13 = vrot.slane %v989_v12, %v2628_v40 }
 0x20c   : > { %v1004_v45 = vcombine.low %v996_v10, %v1003_v13 }
 0x20e   : > { %v1011_v14 = vrot.slane %v1004_v45, %v2628_v40 }
 0x210   : > { %2212 = vst.msk [vmem:[%s2498_s5 + $0x7] ss:$8 sm:$0xf] %vm2632_vm7, %v1011_v14 }
 0x217   : > { %v2661_v15 = vld [vmem:[%s2498_s5 + $0x8] sm:$0xff]  ;;  %v2664_v51 = vld [vmem:[%s2498_s5 + $0x18] sm:$0xff]  ;;  %v2667_v16 = vld [vmem:[%s2498_s5] sm:$0xff] }
 0x218   : > { %v1021_v17 = vpack.c.bf16 %v2661_v15, %v2661_v15  ;;  %v1023_v5 = vpack.c.bf16 %v2664_v51, %v2664_v51  ;;  %v1020_v57 = vpack.c.bf16 %v2667_v16, %v2667_v16  ;;  %v2676_v18 = vld [vmem:[%s2498_s5 + $0x10] sm:$0xff] }
 0x219   : > { %v1022_v53 = vpack.c.bf16 %v2676_v18, %v2676_v18 }
 0x21a   : > { %2214 = vmatprep.subr.msk.bf16.mxu0 %vm1047_vm0, %v1021_v17  ;;  %2216 = vmatprep.subr.msk.bf16.mxu1 %vm1047_vm0, %v1023_v5  ;;  %v1049_v19 = vsel %vm1047_vm0, %v1020_v57, 0 }
 0x21b   : > { %1061 = vmatpush1.bf16.msra.mxu0 %v1049_v19  ;;  %v1055_v20 = vsel %vm1047_vm0, %v1022_v53, 0 }
 0x21c   : > { %1104 = vmatpush1.bf16.msra.mxu1 %v1055_v20 }
 0x21e   : > { %2215 = vmatmul.mubr.msk.bf16.vlgmr.msra.gmra.mrb[8].mxu0 %vm1043_vm1, %v2270_v1 }
 0x21f   : > { %2217 = vmatmul.mubr.msk.bf16.vlgmr.msra.gmra.mrb[8].mxu1 %vm1043_vm1, %v2270_v1  ;;  %1201 = vmatprep.mubr.bf16.mxu0 %v2372_v11 }
 0x220   : > { %1242 = vmatprep.mubr.bf16.mxu1 %v2372_v11 }
 0x28a   : > { %v1805_v6 = vpop.xlane.xlu0 %1804 }
 0x28b   : > { %v1806_v50 = vadd.f32 %v1805_v6, %v1800_v22 }
 0x28d   : > { %1808 = vst.msk [vmem:[#allocation5] sm:$0x1] %vm1807_vm2, %v1806_v50 }
 0x2f1   : > { %v1094_v2 = vpop.f32.mrb[8].mxu0 }
 0x2f2   : > { %v1095_v25 = vadd.f32 %v1094_v2, %v1031_v23  ;;  %v1137_v26 = vpop.f32.mrb[8].mxu1  ;;  %v1096_v27 = vpop.f32.mrb[9].mxu0 }
 0x2f3   : > { %v1138_v28 = vadd.f32 %v1137_v26, %v1031_v23  ;;  %v1097_v29 = vadd.f32 %v1096_v27, %v1031_v23  ;;  %v1139_v30 = vpop.f32.mrb[9].mxu1  ;;  %v1098_v32 = vpop.f32.mrb[10].mxu0 }
 0x2f4   : > { %2295 = vtanh.f32 %v1095_v25  ;;  %v1140_v11 = vadd.f32 %v1139_v30, %v1031_v23  ;;  %v1099_v33 = vadd.f32 %v1098_v32, %v1036_v24  ;;  %v1141_v34 = vpop.f32.mrb[10].mxu1  ;;  %v1100_v35 = vpop.f32.mrb[11].mxu0 }
 0x2f5   : > { %2297 = vtanh.f32 %v1138_v28  ;;  %v1142_v36 = vadd.f32 %v1141_v34, %v1036_v24  ;;  %v1143_v37 = vpop.f32.mrb[11].mxu1  ;;  %v1101_v38 = vadd.f32 %v1100_v35, %v1036_v24 }
 0x2f6   : > { %2299 = vtanh.f32 %v1097_v29  ;;  %v1144_v39 = vadd.f32 %v1143_v37, %v1036_v24 }
 0x2f7   : > { %2301 = vtanh.f32 %v1140_v11 }
 0x2f8   : > { %2303 = vtanh.f32 %v1099_v33 }
 0x2f9   : > { %2305 = vtanh.f32 %v1142_v36 }
 0x2fa   : > { %2307 = vtanh.f32 %v1101_v38 }
 0x2fb   : > { %2309 = vtanh.f32 %v1144_v39 }
 0x2fe   : > { %v2296_v42 = vpop.eup %2295 }
 0x2ff   : > { %v2298_v43 = vpop.eup %2297 }
 0x300   : > { %v2300_v44 = vpop.eup %2299 }
 0x301   : > { %v2302_v46 = vpop.eup %2301 }
 0x302   : > { %v2304_v41 = vpop.eup %2303 }
 0x303   : > { %v2306_v47 = vpop.eup %2305  ;;  %v1155_v48 = vpack.c.bf16 %v2304_v41, %v2296_v42 }
 0x304   : > { %v2308_v52 = vpop.eup %2307  ;;  %v1157_v54 = vpack.c.bf16 %v2306_v47, %v2298_v43 }
 0x305   : > { %v2310_v55 = vpop.eup %2309  ;;  %v1156_v56 = vpack.c.bf16 %v2308_v52, %v2300_v44 }
 0x306   : > { %v1158_v58 = vpack.c.bf16 %v2310_v55, %v2302_v46 }
 0x307   : > { %1169 = vmatprep.subr.bf16.mxu0 %v1156_v56 }
 0x308   : > { %1210 = vmatprep.subr.bf16.mxu1 %v1158_v58  ;;  %1170 = vmatpush1.bf16.msra.mxu0 %v1155_v48 }
 0x309   : > { %1211 = vmatpush1.bf16.msra.mxu1 %v1157_v54  ;;  %1336 = vmatprep.subr.mxu0 %v2661_v15 }
 0x30a   : > { %1406 = vmatprep.subr.mxu1 %v2664_v51 }
 0x30b   : > { %2218 = vmatmul.mubr.msk.bf16.vlgmr.msra.gmra.mrb[12].mxu0 %vm1165_vm3, %v1154_v59 }
 0x30c   : > { %2219 = vmatmul.mubr.msk.bf16.vlgmr.msra.gmra.mrb[12].mxu1 %vm1165_vm3, %v1154_v59 }
 0x311   : > { %1337 = vmatpush1.xpose.msra.mxu0 %v2667_v16 }
 0x312   : > { %1407 = vmatpush1.xpose.msra.mxu1 %v2676_v18  ;;  %1610 = vmatprep.subr.mxu0 %v2661_v15 }
 0x313   : > { %1695 = vmatprep.subr.mxu1 %v2664_v51 }
 0x3de   : > { %v1203_v49 = vpop.f32.mrb[12].mxu0 }
 0x3df   : > { %v1204_v60 = vadd.f32 %v1203_v49, %v2691_v21  ;;  %v1244_v61 = vpop.f32.mrb[12].mxu1  ;;  %v1205_v62 = vpop.f32.mrb[13].mxu0 }
 0x3e0   : > { %v1245_v63 = vadd.f32 %v1244_v61, %v2691_v21  ;;  %v1206_v0 = vadd.f32 %v1205_v62, %v2691_v21  ;;  %v1246_v3 = vpop.f32.mrb[13].mxu1  ;;  %v1207_v4 = vpop.f32.mrb[14].mxu0 }
 0x3e1   : > { %v1251_v7 = vsel %vm1047_vm0, %v1204_v60, -inf  ;;  %v1247_v8 = vadd.f32 %v1246_v3, %v2691_v21  ;;  %v1248_v9 = vpop.f32.mrb[14].mxu1  ;;  %v1208_v10 = vpop.f32.mrb[15].mxu0 }
 0x3e2   : > { %v1252_v12 = vrot.slane %v1251_v7, 4  ;;  %v1265_v13 = vsel %vm1047_vm0, %v1245_v63, -inf  ;;  %v1258_v45 = vsel %vm1047_vm0, %v1206_v0, -inf  ;;  %v1249_v14 = vpop.f32.mrb[15].mxu1 }
 0x3e3   : > { %v1266_v17 = vrot.slane %v1265_v13, 4  ;;  %v1259_v5 = vrot.slane %v1258_v45, 4  ;;  %v1272_v57 = vsel %vm1047_vm0, %v1247_v8, -inf }
 0x3e4   : > { %v1253_v53 = vmax.f32 %v1251_v7, %v1252_v12  ;;  %v1273_v19 = vrot.slane %v1272_v57, 4 }
 0x3e5   : > { %v1267_v1 = vmax.f32 %v1265_v13, %v1266_v17  ;;  %v1260_v20 = vmax.f32 %v1258_v45, %v1259_v5 }
 0x3e6   : > { %v1254_v22 = vrot.slane %v1253_v53, 2  ;;  %v1274_v6 = vmax.f32 %v1272_v57, %v1273_v19 }
 0x3e7   : > { %v1268_v50 = vrot.slane %v1267_v1, 2  ;;  %v1261_v21 = vrot.slane %v1260_v20, 2 }
 0x3e8   : > { %v1255_v23 = vmax.f32 %v1253_v53, %v1254_v22  ;;  %v1275_v24 = vrot.slane %v1274_v6, 2 }
 0x3e9   : > { %v1269_v2 = vmax.f32 %v1267_v1, %v1268_v50  ;;  %v1262_v25 = vmax.f32 %v1260_v20, %v1261_v21 }
 0x3ea   : > { %v1256_v26 = vrot.slane %v1255_v23, 1  ;;  %v1276_v27 = vmax.f32 %v1274_v6, %v1275_v24 }
 0x3eb   : > { %v1270_v28 = vrot.slane %v1269_v2, 1  ;;  %v1263_v29 = vrot.slane %v1262_v25, 1 }
 0x3ec   : > { %v1257_v30 = vmax.f32 %v1255_v23, %v1256_v26  ;;  %v1277_v32 = vrot.slane %v1276_v27, 1 }
 0x3ed   : > { %v1271_v11 = vmax.f32 %v1269_v2, %v1270_v28  ;;  %v1264_v33 = vmax.f32 %v1262_v25, %v1263_v29 }
 0x3ee   : > { %v1279_v34 = vsub.f32 %v1204_v60, %v1257_v30  ;;  %v1278_v35 = vmax.f32 %v1276_v27, %v1277_v32 }
 0x3ef   : > { %v1281_v36 = vsub.f32 %v1245_v63, %v1271_v11  ;;  %v1280_v37 = vsub.f32 %v1206_v0, %v1264_v33 }
 0x3f0   : > { %v1283_v38 = vmul.f32 1.442695, %v1279_v34  ;;  %v1282_v39 = vsub.f32 %v1247_v8, %v1278_v35  ;;  %v2724_v35 = vsub.s32 1, %v2625_v31 }
 0x3f1   : > { %v1287_v42 = vmul.f32 1.442695, %v1281_v36  ;;  %v1285_v43 = vmul.f32 1.442695, %v1280_v37  ;;  %v2727_v36 = vsub.s32 3, %v2625_v31  ;;  %v2730_v37 = vsub.s32 0, %v2625_v31 }
 0x3f2   : > { %2311 = vpow2.f32 %v1283_v38  ;;  %v1289_v44 = vmul.f32 1.442695, %v1282_v39 }
 0x3f3   : > { %2313 = vpow2.f32 %v1287_v42 }
 0x3f4   : > { %2315 = vpow2.f32 %v1285_v43  ;;  %v2733_v43 = vsub.s32 2, %v2625_v31 }
 0x3f5   : > { %2317 = vpow2.f32 %v1289_v44 }
 0x3fc   : > { %v2312_v46 = vpop.eup %2311 }
 0x3fd   : > { %v2314_v41 = vpop.eup %2313  ;;  %v1291_v47 = vsel %vm1047_vm0, %v2312_v46, 0.0 }
 0x3fe   : > { %v2316_v48 = vpop.eup %2315  ;;  %v1292_v52 = vrot.slane %v1291_v47, 4  ;;  %v1305_v54 = vsel %vm1047_vm0, %v2314_v41, 0.0 }
 0x3ff   : > { %v2318_v55 = vpop.eup %2317  ;;  %v1306_v56 = vrot.slane %v1305_v54, 4  ;;  %v1298_v58 = vsel %vm1047_vm0, %v2316_v48, 0.0 }
 0x400   : > { %v1293_v59 = vadd.f32 %v1292_v52, %v1291_v47  ;;  %v1299_v49 = vrot.slane %v1298_v58, 4  ;;  %v1312_v60 = vsel %vm1047_vm0, %v2318_v55, 0.0 }
 0x401   : > { %v1307_v61 = vadd.f32 %v1306_v56, %v1305_v54  ;;  %v1313_v62 = vrot.slane %v1312_v60, 4 }
 0x402   : > { %v1294_v63 = vrot.slane %v1293_v59, 2  ;;  %v1300_v0 = vadd.f32 %v1299_v49, %v1298_v58 }
 0x403   : > { %v1308_v3 = vrot.slane %v1307_v61, 2  ;;  %v1314_v4 = vadd.f32 %v1313_v62, %v1312_v60 }
 0x404   : > { %v1295_v7 = vadd.f32 %v1294_v63, %v1293_v59  ;;  %v1301_v8 = vrot.slane %v1300_v0, 2 }
 0x405   : > { %v1309_v9 = vadd.f32 %v1308_v3, %v1307_v61  ;;  %v1315_v10 = vrot.slane %v1314_v4, 2 }
 0x406   : > { %v1296_v12 = vrot.slane %v1295_v7, 1  ;;  %v1302_v13 = vadd.f32 %v1301_v8, %v1300_v0 }
 0x407   : > { %v1310_v45 = vrot.slane %v1309_v9, 1  ;;  %v1316_v14 = vadd.f32 %v1315_v10, %v1314_v4 }
 0x408   : > { %v1303_v17 = vrot.slane %v1302_v13, 1  ;;  %v1297_v5 = vadd.f32 %v1296_v12, %v1295_v7 }
 0x409   : > { %v1317_v57 = vrot.slane %v1316_v14, 1  ;;  %v1311_v53 = vadd.f32 %v1310_v45, %v1309_v9 }
 0x40a   : > { %v1304_v19 = vadd.f32 %v1303_v17, %v1302_v13  ;;  %2319 = vrcp.f32 %v1297_v5 }
 0x40b   : > { %v1318_v1 = vadd.f32 %v1317_v57, %v1316_v14  ;;  %2321 = vrcp.f32 %v1311_v53 }
 0x40c   : > { %2323 = vrcp.f32 %v1304_v19 }
 0x40d   : > { %2325 = vrcp.f32 %v1318_v1 }
 0x414   : > { %v2320_v20 = vpop.eup %2319 }
 0x415   : > { %v2322_v22 = vpop.eup %2321  ;;  %v1323_v6 = vmul.f32 %v2320_v20, %v2312_v46 }
 0x416   : > { %v2324_v50 = vpop.eup %2323  ;;  %v1325_v21 = vmul.f32 %v2322_v22, %v2314_v41 }
 0x417   : > { %v2326_v23 = vpop.eup %2325  ;;  %v1324_v24 = vmul.f32 %v2324_v50, %v2316_v48  ;;  %v1327_v2 = vsel %vm1047_vm0, %v1323_v6, 0.0 }
 0x418   : > { %v1326_v25 = vmul.f32 %v2326_v23, %v2318_v55  ;;  %v1330_v32 = vsel %vm1047_vm0, %v1325_v21, 0.0 }
 0x419   : > { %1400 = vmatprep.mubr.f32.mxu0 %v1324_v24  ;;  %v1480_v26 = vcombine.low %v1323_v6, %v1324_v24  ;;  %v1328_v27 = vsel %vm1047_vm0, %v1324_v24, 0.0  ;;  %v1784_v24 = vld [vmem:[#allocation3] sm:$0xf] }
 0x41a   : > { %1470 = vmatprep.mubr.f32.mxu1 %v1326_v25  ;;  %1401 = vmatmul.mubr.f32.vlgmr.msra.gmra.mrb[16].mxu0 %v1323_v6  ;;  %v1481_v28 = vcombine.low %v1325_v21, %v1326_v25  ;;  %v1329_v29 = vadd.f32 %v1328_v27, %v1327_v2  ;;  %v1332_v34 = vsel %vm1047_vm0, %v1326_v25, 0.0  ;;  %v1780_v6 = vld [vmem:[#allocation2] sm:$0xf]  ;;  %v1788_v27 = vld [vmem:[#allocation4] sm:$0xff] }
 0x41b   : > { %v1488_v30 = vrot.slane %v1480_v26, %v2628_v40  ;;  %1471 = vmatmul.mubr.f32.vlgmr.msra.gmra.mrb[16].mxu1 %v1325_v21  ;;  %1611 = vmatpush1.xpose.msra.mxu0 %v2667_v16 }
 0x41c   : > { %v1495_v11 = vrot.slane %v1481_v28, %v2628_v40  ;;  %1696 = vmatpush1.xpose.msra.mxu1 %v2676_v18  ;;  %v1331_v33 = vadd.f32 %v1330_v32, %v1329_v29 }
 0x41e   : > { %v1496_v38 = vcombine.low %v1488_v30, %v1495_v11  ;;  %v1497_v39 = vcombine.high %v1488_v30, %v1495_v11  ;;  %v1333_v42 = vadd.f32 %v1332_v34, %v1331_v33  ;;  %v1789_v34 = vld [vmem:[#allocation4 + $0x8] sm:$0xff] }
 0x420   : > { %v1504_v44 = vrot.slane %v1496_v38, %v2628_v40  ;;  %v1511_v46 = vrot.slane %v1497_v39, %v2628_v40  ;;  %1334 = vadd.xlane.f32.xlu1 %v1333_v42 }
 0x422   : > { %v1521_v41 = vrot.slane %v1504_v44, %v2724_v35  ;;  %v1529_v47 = vrot.slane %v1504_v44, %v2727_v36  ;;  %v1517_v48 = vrot.slane %v1504_v44, %v2730_v37  ;;  %v1525_v52 = vrot.slane %v1504_v44, %v2733_v43 }
 0x423   : > { %v1537_v54 = vrot.slane %v1511_v46, %v2724_v35  ;;  %v1545_v55 = vrot.slane %v1511_v46, %v2727_v36  ;;  %v1533_v60 = vrot.slane %v1511_v46, %v2730_v37  ;;  %v1541_v61 = vrot.slane %v1511_v46, %v2733_v43 }
 0x424   : > { %v1595_v31 = vmul.f32 %v1521_v41, %v2661_v15  ;;  %v1597_v56 = vmul.f32 %v1529_v47, %v2664_v51  ;;  %v1594_v58 = vmul.f32 %v1517_v48, %v2667_v16  ;;  %v1596_v59 = vmul.f32 %v1525_v52, %v2676_v18  ;;  %v1790_v47 = vld [vmem:[#allocation4 + $0x10] sm:$0xff] }
 0x425   : > { %v1599_v49 = vmul.f32 %v1537_v54, %v2661_v15  ;;  %v1601_v62 = vmul.f32 %v1545_v55, %v2664_v51  ;;  %v1512_v63 = vcombine.high %v1504_v44, %v1504_v44  ;;  %v1513_v0 = vcombine.high %v1511_v46, %v1511_v46 }
 0x426   : > { %1674 = vmatprep.mubr.f32.mxu0 %v1595_v31  ;;  %1759 = vmatprep.mubr.f32.mxu1 %v1597_v56  ;;  %v1598_v7 = vmul.f32 %v1533_v60, %v2667_v16  ;;  %v1600_v8 = vmul.f32 %v1541_v61, %v2676_v18 }
 0x427   : > { %1675 = vmatmul.mubr.f32.vlgmr.msra.gmra.mrb[18].mxu0 %v1594_v58  ;;  %1760 = vmatmul.mubr.f32.vlgmr.msra.gmra.mrb[18].mxu1 %v1596_v59  ;;  %v1553_v3 = vrot.slane %v1512_v63, %v2724_v35  ;;  %v1561_v4 = vrot.slane %v1512_v63, %v2727_v36  ;;  %v1549_v9 = vrot.slane %v1512_v63, %v2730_v37  ;;  %v1791_v58 = vld [vmem:[#allocation4 + $0x18] sm:$0xff] }
 0x428   : > { %1679 = vmatprep.mubr.f32.mxu0 %v1599_v49  ;;  %1764 = vmatprep.mubr.f32.mxu1 %v1601_v62  ;;  %v1557_v10 = vrot.slane %v1512_v63, %v2733_v43  ;;  %v1569_v45 = vrot.slane %v1513_v0, %v2724_v35  ;;  %v1577_v14 = vrot.slane %v1513_v0, %v2727_v36  ;;  %v2374_v63 = vmov (!%p2220_p8), 0  }
 0x429   : > { %v1603_v12 = vmul.f32 %v1553_v3, %v2661_v15  ;;  %v1605_v13 = vmul.f32 %v1561_v4, %v2664_v51  ;;  %v1602_v17 = vmul.f32 %v1549_v9, %v2667_v16  ;;  %v1565_v57 = vrot.slane %v1513_v0, %v2730_v37  ;;  %2327 = vset.pattern.permute.xlu0 (!%p2220_p8), %v2374_v63 }
 0x42a   : > { %v1604_v5 = vmul.f32 %v1557_v10, %v2676_v18  ;;  %v1573_v53 = vrot.slane %v1513_v0, %v2733_v43  ;;  %v1607_v19 = vmul.f32 %v1569_v45, %v2661_v15  ;;  %v1609_v1 = vmul.f32 %v1577_v14, %v2664_v51  ;;  %2328 = vset.pattern.permute.xlu1 (!%p2220_p8), %v2374_v63 }
 0x42b   : > { %1680 = vmatmul.mubr.f32.gmra.mrb[20].mxu0 %v1598_v7  ;;  %1765 = vmatmul.mubr.f32.gmra.mrb[20].mxu1 %v1600_v8  ;;  %v1606_v20 = vmul.f32 %v1565_v57, %v2667_v16 }
 0x42c   : > { %1684 = vmatprep.mubr.f32.mxu0 %v1603_v12  ;;  %1769 = vmatprep.mubr.f32.mxu1 %v1605_v13  ;;  %v1608_v22 = vmul.f32 %v1573_v53, %v2676_v18 }
 0x42f   : > { %1685 = vmatmul.mubr.f32.gmra.mrb[22].mxu0 %v1602_v17  ;;  %1770 = vmatmul.mubr.f32.gmra.mrb[22].mxu1 %v1604_v5 }
 0x430   : > { %1689 = vmatprep.mubr.f32.mxu0 %v1607_v19  ;;  %1774 = vmatprep.mubr.f32.mxu1 %v1609_v1  ;;  %v1975_v19 = vld [vmem:[#allocation5] sm:$0x1] (!%p2220_p8) }
 0x431   : > { %1976 = vst.msk [vmem:[%s520_s20] sm:$0x1] (!%p2220_p8), %vm1807_vm2, %v1975_v19 }
 0x433   : > { %1690 = vmatmul.mubr.f32.gmra.mrb[24].mxu0 %v1606_v20  ;;  %1775 = vmatmul.mubr.f32.gmra.mrb[24].mxu1 %v1608_v22 }
 0x4ad   : > { %v1335_v50 = vpop.xlane.xlu1 %1334 }
 0x4ae   : > { %v1781_v21 = vadd.f32 %v1780_v6, %v1335_v50 }
 0x4b0   : > { %1783 = vst.msk [vmem:[#allocation2] sm:$0xf] %vm1782_vm4, %v1781_v21 }
 0x4b7   : > { %v1813_v62 = vld [vmem:[#allocation2] sm:$0xf] (!%p2220_p8) }
 0x4b8   : > { %v1814_v0 = vadd.f32 (!%p2220_p8), 1e-12, %v1813_v62  ;;  %v1816_v3 = vmul.f32 (!%p2220_p8), 0.0009765625, %v1813_v62 }
 0x4ba   : > { %2329 = vrcp.f32 (!%p2220_p8), %v1814_v0  ;;  %1969 = vst.msk [vmem:[%s2485_s21] sm:$0xf] (!%p2220_p8), %vm1782_vm4, %v1816_v3 }
 0x4c4   : > { %v2330_v4 = vpop.eup (!%p2220_p8), %2329 }
 0x4c5   : > { %1820 = vperm.xlu0 (!%p2220_p8), %2327, %v2330_v4   ;;  %v1834_v7 = vrot.slane (!%p2220_p8), %v2330_v4, %v2628_v40 }
 0x4c7   : > { %v1842_v8 = vrot.slane (!%p2220_p8), %v1834_v7, %v2628_v40  ;;  %v1835_v9 = vcombine.high (!%p2220_p8), %v1834_v7, %v1834_v7 }
 0x4c9   : > { %v1855_v10 = vrot.slane (!%p2220_p8), %v1842_v8, %v2730_v37  ;;  %v1849_v12 = vrot.slane (!%p2220_p8), %v1835_v9, %v2628_v40  ;;  %v1850_v13 = vcombine.high (!%p2220_p8), %v1842_v8, %v1842_v8 }
 0x4cb   : > { %1869 = vperm.xlu0 (!%p2220_p8), %2327, %v1855_v10   ;;  %v1851_v45 = vcombine.high (!%p2220_p8), %v1849_v12, %v1849_v12  ;;  %v1859_v14 = vrot.slane (!%p2220_p8), %v1849_v12, %v2730_v37  ;;  %v1863_v5 = vrot.slane (!%p2220_p8), %v1850_v13, %v2730_v37 }
 0x4cd   : > { %v1867_v17 = vrot.slane (!%p2220_p8), %v1851_v45, %v2730_v37  ;;  %1873 = vperm.xlu1 (!%p2220_p8), %2328, %v1859_v14  }
 0x4cf   : > { %1881 = vperm.xlu0 (!%p2220_p8), %2327, %v1867_v17  }
 0x4d1   : > { %1877 = vperm.xlu1 (!%p2220_p8), %2328, %v1863_v5  }
 0x4ed   : > { %v1402_v23 = vpop.f32.mrb[16].mxu0 }
 0x4ee   : > { %v1472_v15 = vpop.f32.mrb[16].mxu1  ;;  %v1404_v51 = vpop.f32.mrb[17].mxu0 }
 0x4ef   : > { %v1473_v2 = vadd.f32 %v1472_v15, %v1402_v23  ;;  %v1474_v25 = vpop.f32.mrb[17].mxu1 }
 0x4f1   : > { %v1785_v26 = vadd.f32 %v1784_v24, %v1473_v2 }
 0x4f3   : > { %1787 = vst.msk [vmem:[#allocation3] sm:$0xf] %vm1786_vm5, %v1785_v26 }
 0x4fa   : > { %v1676_v16 = vpop.f32.mrb[18].mxu0  ;;  %v1761_v18 = vpop.f32.mrb[18].mxu1  ;;  %v1817_v57 = vld [vmem:[#allocation3] sm:$0xf] (!%p2220_p8) }
 0x4fb   : > { %v1762_v28 = vadd.f32 %v1761_v18, %v1676_v16  ;;  %v1678_v29 = vpop.f32.mrb[19].mxu0  ;;  %v1763_v30 = vpop.f32.mrb[19].mxu1 }
 0x4fd   : > { %v1792_v32 = vadd.f32 %v1788_v27, %v1762_v28 }
 0x4fe   : > { %v1681_v11 = vpop.f32.mrb[20].mxu0  ;;  %v1766_v33 = vpop.f32.mrb[20].mxu1 }
 0x4ff   : > { %1796 = vst.msk [vmem:[#allocation4] sm:$0xff] %vm1043_vm1, %v1792_v32  ;;  %v1767_v38 = vadd.f32 %v1766_v33, %v1681_v11  ;;  %v1683_v39 = vpop.f32.mrb[21].mxu0  ;;  %v1768_v42 = vpop.f32.mrb[21].mxu1 }
 0x501   : > { %v1793_v44 = vadd.f32 %v1789_v34, %v1767_v38 }
 0x502   : > { %v1686_v46 = vpop.f32.mrb[22].mxu0  ;;  %v1771_v41 = vpop.f32.mrb[22].mxu1 }
 0x503   : > { %1797 = vst.msk [vmem:[#allocation4 + $0x8] sm:$0xff] %vm1043_vm1, %v1793_v44  ;;  %v1772_v48 = vadd.f32 %v1771_v41, %v1686_v46  ;;  %v1688_v52 = vpop.f32.mrb[23].mxu0  ;;  %v1773_v54 = vpop.f32.mrb[23].mxu1 }
 0x505   : > { %v1794_v55 = vadd.f32 %v1790_v47, %v1772_v48  ;;  %1812 = sbr.rel (%p2220_p8) target bundleno = 1477 (0x5c5), region = 64 }
 0x506   : > { %v1691_v31 = vpop.f32.mrb[24].mxu0  ;;  %v1776_v56 = vpop.f32.mrb[24].mxu1 }
 0x507   : > { %1798 = vst.msk [vmem:[#allocation4 + $0x10] sm:$0xff] %vm1043_vm1, %v1794_v55  ;;  %v1777_v59 = vadd.f32 %v1776_v56, %v1691_v31  ;;  %v1693_v49 = vpop.f32.mrb[25].mxu0  ;;  %v1778_v60 = vpop.f32.mrb[25].mxu1 }
 0x509   : > { %v1795_v61 = vadd.f32 %v1791_v58, %v1777_v59 }
 0x50a   : > { %v1825_v16 = vld [vmem:[#allocation4 + $0x8] sm:$0xff] (!%p2220_p8) }
 0x50b   : > { %1799 = vst.msk [vmem:[#allocation4 + $0x18] sm:$0xff] %vm1043_vm1, %v1795_v61 }
 0x512   : > { %v1827_v34 = vld [vmem:[#allocation4 + $0x18] sm:$0xff] }
 0x544   : > { %v1821_v53 = vpop.permute.xlu0 %1820 }
 0x545   : > { %v1823_v1 = vmul.f32 %v1821_v53, %v1817_v57 }
 0x547   : > { %1970 = vst.msk [vmem:[%s2490_s14] sm:$0xf] %vm1786_vm5, %v1823_v1  ;;  %v1891_v20 = vrot.slane %v1823_v1, %v2730_v37  ;;  %v1898_v22 = vrot.slane %v1823_v1, %v2724_v35  ;;  %v1905_v6 = vrot.slane %v1823_v1, %v2733_v43  ;;  %v1912_v50 = vrot.slane %v1823_v1, %v2727_v36  ;;  %v1824_v35 = vld [vmem:[#allocation4] sm:$0xff] }
 0x548   : > { %v1923_v21 = vrot.slane %v1823_v1, %v2628_v40 }
 0x549   : > { %1893 = vbcast.lane.b32.xlu1 %v1891_v20, 256  ;;  %1900 = vbcast.lane.b32.xlu0 %v1898_v22, 256 }
 0x54a   : > { %v1870_v23 = vpop.permute.xlu0 %1869  ;;  %v1924_v24 = vcombine.high %v1923_v21, %v1923_v21  ;;  %v1931_v51 = vrot.slane %v1923_v21, %v2628_v40 }
 0x54b   : > { %v1884_v30 = vmul.f32 %v1870_v23, %v1824_v35 }
 0x54c   : > { %v1874_v15 = vpop.permute.xlu1 %1873  ;;  %v1938_v2 = vrot.slane %v1924_v24, %v2628_v40  ;;  %v1944_v18 = vrot.slane %v1931_v51, %v2730_v37  ;;  %v1939_v36 = vcombine.high %v1931_v51, %v1931_v51  ;;  %v1826_v40 = vld [vmem:[#allocation4 + $0x10] sm:$0xff] }
 0x54d   : > { %1907 = vbcast.lane.b32.xlu1 %v1905_v6, 256  ;;  %1914 = vbcast.lane.b32.xlu0 %v1912_v50, 256  ;;  %v1885_v32 = vmul.f32 %v1874_v15, %v1825_v16 }
 0x54e   : > { %v1882_v25 = vpop.permute.xlu0 %1881  ;;  %v1948_v43 = vrot.slane %v1938_v2, %v2730_v37  ;;  %v1940_v27 = vcombine.high %v1938_v2, %v1938_v2  ;;  %v1952_v42 = vrot.slane %v1939_v36, %v2730_v37 }
 0x54f   : > { %v1887_v47 = vmul.f32 %v1882_v25, %v1827_v34 }
 0x550   : > { %v1878_v26 = vpop.permute.xlu1 %1877  ;;  %v1956_v44 = vrot.slane %v1940_v27, %v2730_v37 }
 0x551   : > { %v1886_v48 = vmul.f32 %v1878_v26, %v1826_v40 }
 0x5bb   : > { %v1894_v28 = vpop.permute.xlu1 %1893  ;;  %v1901_v29 = vpop.permute.xlu0 %1900 }
 0x5bc   : > { %v1961_v11 = vmul.f32 %v1944_v18, %v1894_v28  ;;  %v1962_v33 = vmul.f32 %v1948_v43, %v1901_v29 }
 0x5be   : > { %v1965_v38 = vsub.f32 %v1884_v30, %v1961_v11  ;;  %v1966_v39 = vsub.f32 %v1885_v32, %v1962_v33 }
 0x5bf   : > { %v1908_v46 = vpop.permute.xlu1 %1907  ;;  %v1915_v41 = vpop.permute.xlu0 %1914 }
 0x5c0   : > { %1971 = vst.msk [vmem:[%s2508_s23] sm:$0xff] %vm1043_vm1, %v1965_v38  ;;  %1972 = vst.msk [vmem:[%s2508_s23 + $0x8] sm:$0xff] %vm1043_vm1, %v1966_v39  ;;  %v1963_v52 = vmul.f32 %v1952_v42, %v1908_v46  ;;  %v1964_v54 = vmul.f32 %v1956_v44, %v1915_v41 }
 0x5c2   : > { %v1967_v55 = vsub.f32 %v1886_v48, %v1963_v52  ;;  %v1968_v31 = vsub.f32 %v1887_v47, %v1964_v54 }
 0x5c4   : > { %1973 = vst.msk [vmem:[%s2508_s23 + $0x10] sm:$0xff] %vm1043_vm1, %v1967_v55  ;;  %1974 = vst.msk [vmem:[%s2508_s23 + $0x18] sm:$0xff] %vm1043_vm1, %v1968_v31 }
 0x5c5 PF: > { %s2857_s26 = sld [smem:[#allocation8_spill]]  ;;  %s2858_s25 = sld [smem:[#allocation6_spill]] }
 0x5c6   : > { %s2860_s27 = sld [smem:[#allocation9_spill]]  ;;  %s2861_s28 = sld [smem:[#allocation10_spill]] }
 0x5cb   : > { %s24_s29 = sadd.s32 1, %s2857_s26   ;;  %s2859_s26 = sld [smem:[#allocation7_spill]] }
 0x5cc   : > { %p21_p9 = scmp.ge.s32.totalorder %s24_s29, 10  }
 0x5ce   :  { %23 = sbr.rel (!%p21_p9) target bundleno = 4 (0x4), region = 144 }

</bundles_post_ra>
